<compile_context>
chip_gen: v7x
topology: tpu7x:2x2x1
jax: 0.10.0
libtpu: 0.0.40
codegen_flags: <defaults>
</compile_context>

<pallas_src>
import functools
import math

import jax
import jax.numpy as jnp
from jax import lax
from jax.experimental import pallas as pl
from jax.experimental.pallas import tpu as pltpu


# ------------------------------ Pallas kernel ------------------------------ #

def _full_spec(shape):
    nd = len(shape)
    return pl.BlockSpec(shape, lambda *_: (0,) * nd)


def _gnn_moe_fused_kernel(
        x_ref, a_ref, pool_ref, lane_ref, gw_ref, gb_ref,
        w0_ref, b0_ref, wx_ref, bx_ref,
        m1w_ref, m1b_ref, m2w_ref, m2b_ref,
        out_ref, loss_ref,
        *, num_experts, hidden, num_layers, min_layers,
        top_k, coef, mxu_dtype):
    f32 = jnp.float32
    e_num, h = num_experts, hidden
    eh = e_num * h

    x = x_ref[...]                       # (N, F)  bf16 (host pre-cast)
    a = a_ref[...]                       # (N, N)  bf16
    n = x.shape[0]
    lane_e = lane_ref[...]               # (1, EH) f32 per-lane expert id 0..E-1

    # ---------------- gate: softmax + exact top-k, all in-kernel ------------
    logits = jnp.dot(x, gw_ref[...], preferred_element_type=f32) + gb_ref[...]
    logits_max = jnp.max(logits, axis=-1, keepdims=True)
    unnorm = jnp.exp(logits - logits_max)
    gates_full = unnorm / jnp.sum(unnorm, axis=-1, keepdims=True)      # (N, E)

    lane_f = lax.broadcasted_iota(jnp.int32, (n, e_num), 1).astype(f32)
    work = gates_full
    mask = jnp.zeros((n, e_num), f32)
    for _ in range(top_k):       # exact top-k; ties -> lowest expert index
        mx = jnp.max(work, axis=-1, keepdims=True)
        cand = jnp.where(work >= mx, lane_f, float(e_num))
        sel = jnp.min(cand, axis=-1, keepdims=True)
        is_sel = lane_f == sel
        mask = mask + jnp.where(is_sel, 1.0, 0.0)
        work = jnp.where(is_sel, -1e30, work)

    gates = gates_full * mask
    gates = gates / jnp.maximum(jnp.sum(gates, axis=-1, keepdims=True), 1e-12)

    # load-balance loss (switch-style): XLU sublane reductions, no M=1 matmuls
    imp = jnp.sum(gates_full, axis=0, keepdims=True)                   # (1, E)
    load = jnp.sum(mask, axis=0, keepdims=True)                        # (1, E)
    loss_ref[...] = (coef * e_num / float(n * n)) * jnp.sum(
        imp * load, axis=-1, keepdims=True)

    # --------------- experts: lane-packed GCN stacks, slab (N, E*H) ----------
    # layer 0 (F -> H for every expert) packed along lanes
    ax = jnp.dot(a, x, preferred_element_type=f32)                     # (N, F)
    slab = jnp.dot(ax.astype(mxu_dtype), w0_ref[...],
                   preferred_element_type=f32) + b0_ref[...]
    slab = jnp.maximum(slab, 0.0)                                      # (N, EH)

    for layer in range(1, num_layers):
        prop = jnp.dot(a, slab.astype(mxu_dtype), preferred_element_type=f32)
        new = jnp.dot(prop.astype(mxu_dtype), wx_ref[layer - 1],
                      preferred_element_type=f32) + bx_ref[layer - 1]
        new = jnp.maximum(new, 0.0)
        # only experts whose depth exceeds `layer` take this step
        active = jnp.broadcast_to(
            lane_e >= float(layer - min_layers + 1), (n, eh))
        slab = jnp.where(active, new, slab)

    # ----------------- combine (exact f32 gates), pool, final MLP ------------
    gates_lanes = jnp.zeros((n, eh), f32)
    for e in range(e_num):                 # exact f32 expansion (N,E)->(N,EH)
        sel_e = jnp.broadcast_to(lane_e == float(e), (n, eh))
        g_e = jnp.broadcast_to(gates[:, e:e + 1], (n, eh))
        gates_lanes = jnp.where(sel_e, g_e, gates_lanes)
    weighted = slab * gates_lanes

    # graph mean-pool on the packed slab -> (G, EH)
    pooled_packed = jnp.dot(pool_ref[...], weighted.astype(mxu_dtype),
                            preferred_element_type=f32)

    # per-expert block reduction folded into the first MLP matmul:
    # m1w_ref is mlp_w1 tiled to (EH, H), so this equals (sum_e block_e) @ W1.
    h1 = jnp.dot(pooled_packed.astype(mxu_dtype), m1w_ref[...],
                 preferred_element_type=f32) + m1b_ref[...]
    h1 = jnp.maximum(h1, 0.0)
    out = jnp.dot(h1.astype(mxu_dtype), m2w_ref[...],
                  preferred_element_type=f32) + m2b_ref[...]
    out_ref[...] = out.astype(out_ref.dtype)


def gnn_moe_forward(params, x, a_hat, pool_mat, *, num_layers, min_layers,
                    top_k, coef, mxu_dtype=jnp.bfloat16):
    num_experts = num_layers - min_layers + 1
    hidden = params["mlp_w1"].shape[0]
    out_channels = params["mlp_w2"].shape[1]
    num_graphs = pool_mat.shape[0]

    # ---- host-side packing / bf16 casting of all MXU operands --------------
    # (in production, do this once at load time instead of per call)
    bf = lambda t: t.astype(mxu_dtype)
    m1w_tiled = jnp.tile(params["mlp_w1"], (num_experts, 1))           # (EH, H)
    lane_row = jnp.repeat(
        jnp.arange(num_experts, dtype=jnp.float32), hidden)[None, :]   # (1, EH)

    args = (bf(x), bf(a_hat), bf(pool_mat), lane_row,
            bf(params["gate_w"]), params["gate_b"],
            bf(params["w0"]), params["b0"],
            bf(params["w_extra"]), params["b_extra"],
            bf(m1w_tiled), params["mlp_b1"],
            bf(params["mlp_w2"]), params["mlp_b2"])

    kern = functools.partial(
        _gnn_moe_fused_kernel,
        num_experts=num_experts, hidden=hidden, num_layers=num_layers,
        min_layers=min_layers, top_k=top_k, coef=float(coef),
        mxu_dtype=mxu_dtype)

    out_shapes = (jax.ShapeDtypeStruct((num_graphs, out_channels), jnp.float32),
                  jax.ShapeDtypeStruct((1, 1), jnp.float32))

    # explicit scoped-VMEM limit sized from the actual buffers (x2 for
    # double-buffering + headroom); avoids the 16/32 MiB default at large N.
    total_bytes = sum(int(a.size) * a.dtype.itemsize for a in args)
    total_bytes += sum(math.prod(s.shape) * 4 for s in out_shapes)
    vmem_limit = int(min(100 * 1024 * 1024,
                         max(16 * 1024 * 1024, 2 * total_bytes + (2 << 20))))

    out, lb = pl.pallas_call(
        kern,
        out_shape=out_shapes,
        in_specs=[_full_spec(a.shape) for a in args],
        out_specs=(_full_spec((num_graphs, out_channels)), _full_spec((1, 1))),
        compiler_params=pltpu.CompilerParams(vmem_limit_bytes=vmem_limit),
    )(*args)
    return out, lb[0, 0]


# ------------------------------- glue (JAX) -------------------------------- #
# TODO(synk): edge_index -> dense A_hat and batch -> pool matrix use scatter,
#             which has no clean single-block Pallas equivalent; kept as
#             one-time JAX preprocessing.

def build_normalized_adjacency(edge_index, num_nodes):
    src, dst = edge_index[0], edge_index[1]
    a = jnp.zeros((num_nodes, num_nodes), jnp.float32)
    a = a.at[src, dst].set(1.0)
    a = jnp.maximum(a, a.T)                        # symmetrize
    a = a + jnp.eye(num_nodes, dtype=jnp.float32)  # self loops
    deg = jnp.sum(a, axis=1)
    d_inv_sqrt = 1.0 / jnp.sqrt(jnp.maximum(deg, 1e-12))
    return a * d_inv_sqrt[:, None] * d_inv_sqrt[None, :]


def build_mean_pool_matrix(batch, num_graphs):
    onehot = jax.nn.one_hot(batch, num_graphs, dtype=jnp.float32).T   # (G, N)
    counts = jnp.maximum(jnp.sum(onehot, axis=1, keepdims=True), 1.0)
    return onehot / counts


def init_params(key, in_channels, hidden, out_channels, num_layers, min_layers):
    num_experts = num_layers - min_layers + 1
    eh = num_experts * hidden
    n_extra = max(num_layers - 1, 1)

    def glorot(k, shape):
        fan_in, fan_out = shape[-2], shape[-1]
        lim = jnp.sqrt(6.0 / (fan_in + fan_out))
        return jax.random.uniform(k, shape, jnp.float32, -lim, lim)

    n_keys = 3 + sum(range(min_layers, num_layers + 1))
    ki = iter(jax.random.split(key, n_keys))

    params = {
        "gate_w": glorot(next(ki), (in_channels, num_experts)),
        "gate_b": jnp.zeros((1, num_experts), jnp.float32),
        "mlp_w1": glorot(next(ki), (hidden, hidden)),
        "mlp_b1": jnp.zeros((1, hidden), jnp.float32),
        "mlp_w2": glorot(next(ki), (hidden, out_channels)),
        "mlp_b2": jnp.zeros((1, out_channels), jnp.float32),
    }

    # lane-packed expert weights: layer 0 concatenated, extra layers block-diag
    w0_blocks, b0_blocks = [], []
    w_extra = jnp.zeros((n_extra, eh, eh), jnp.float32)
    b_extra = jnp.zeros((n_extra, 1, eh), jnp.float32)
    for e in range(num_experts):
        depth = min_layers + e
        w0_blocks.append(glorot(next(ki), (in_channels, hidden)))
        b0_blocks.append(jnp.zeros((hidden,), jnp.float32))
        for l in range(1, depth):
            w = glorot(next(ki), (hidden, hidden))
            w_extra = w_extra.at[l - 1, e * hidden:(e + 1) * hidden,
                                 e * hidden:(e + 1) * hidden].set(w)
            # biases stay zero (matches the reference init)
    params["w0"] = jnp.concatenate(w0_blocks, axis=1)         # (F, E*H)
    params["b0"] = jnp.concatenate(b0_blocks)[None, :]        # (1, E*H)
    params["w_extra"] = w_extra                               # (L-1, E*H, E*H)
    params["b_extra"] = b_extra                               # (L-1, 1, E*H)
    return params


# ---------------------------------- main ----------------------------------- #

if __name__ == "__main__":
    IN_CHANNELS = 16
    HIDDEN = 32
    OUT_CHANNELS = 8
    NUM_LAYERS = 4
    MIN_LAYERS = 1          # => 4 experts, 4 * 32 = 128 packed lanes
    TOP_K = 2
    COEF = 1e-2
    NUM_NODES = 32
    NUM_GRAPHS = 2
    NUM_EDGES = 64

    key = jax.random.PRNGKey(0)
    k_x, k_e, k_p = jax.random.split(key, 3)

    x = jax.random.normal(k_x, (NUM_NODES, IN_CHANNELS), jnp.float32)
    edge_index = jax.random.randint(k_e, (2, NUM_EDGES), 0, NUM_NODES, jnp.int32)
    batch = jnp.concatenate([jnp.zeros((NUM_NODES // 2,), jnp.int32),
                             jnp.ones((NUM_NODES - NUM_NODES // 2,), jnp.int32)])

    a_hat = build_normalized_adjacency(edge_index, NUM_NODES)
    pool_mat = build_mean_pool_matrix(batch, NUM_GRAPHS)

    params = init_params(k_p, IN_CHANNELS, HIDDEN, OUT_CHANNELS,
                         NUM_LAYERS, MIN_LAYERS)

    out, lb_loss = gnn_moe_forward(
        params, x, a_hat, pool_mat,
        num_layers=NUM_LAYERS, min_layers=MIN_LAYERS,
        top_k=TOP_K, coef=COEF, mxu_dtype=jnp.bfloat16)
    jax.block_until_ready((out, lb_loss))

    assert out.shape == (NUM_GRAPHS, OUT_CHANNELS)
    assert jnp.all(jnp.isfinite(out)) and jnp.isfinite(lb_loss)
    print("KERNEL_OK")
</pallas_src>

<mosaic_0001>
module attributes {stable_mosaic.version = 11 : i64} {
  func.func @_gnn_moe_fused_kernel(%arg0: memref<32x16xbf16, #tpu.memory_space<vmem>>, %arg1: memref<32x32xbf16, #tpu.memory_space<vmem>>, %arg2: memref<2x32xbf16, #tpu.memory_space<vmem>>, %arg3: memref<1x128xf32, #tpu.memory_space<vmem>>, %arg4: memref<16x4xbf16, #tpu.memory_space<vmem>>, %arg5: memref<1x4xf32, #tpu.memory_space<vmem>>, %arg6: memref<16x128xbf16, #tpu.memory_space<vmem>>, %arg7: memref<1x128xf32, #tpu.memory_space<vmem>>, %arg8: memref<3x128x128xbf16, #tpu.memory_space<vmem>>, %arg9: memref<3x1x128xf32, #tpu.memory_space<vmem>>, %arg10: memref<128x32xbf16, #tpu.memory_space<vmem>>, %arg11: memref<1x32xf32, #tpu.memory_space<vmem>>, %arg12: memref<32x8xbf16, #tpu.memory_space<vmem>>, %arg13: memref<1x8xf32, #tpu.memory_space<vmem>>, %arg14: memref<2x8xf32, #tpu.memory_space<vmem>>, %arg15: memref<1x1xf32, #tpu.memory_space<vmem>>) attributes {dimension_semantics = [], scalar_prefetch = 0 : i64, scratch_operands = 0 : i64, tpu.core_type = #tpu.core_type<tc>} {
    %c0 = arith.constant 0 : index
    %c0_0 = arith.constant 0 : index
    %0 = vector.load %arg0[%c0, %c0_0] : memref<32x16xbf16, #tpu.memory_space<vmem>>, vector<32x16xbf16>
    %c0_1 = arith.constant 0 : index
    %c0_2 = arith.constant 0 : index
    %1 = vector.load %arg1[%c0_1, %c0_2] : memref<32x32xbf16, #tpu.memory_space<vmem>>, vector<32x32xbf16>
    %c0_3 = arith.constant 0 : index
    %c0_4 = arith.constant 0 : index
    %2 = vector.load %arg3[%c0_3, %c0_4] : memref<1x128xf32, #tpu.memory_space<vmem>>, vector<1x128xf32>
    %c0_5 = arith.constant 0 : index
    %c0_6 = arith.constant 0 : index
    %3 = vector.load %arg4[%c0_5, %c0_6] : memref<16x4xbf16, #tpu.memory_space<vmem>>, vector<16x4xbf16>
    %cst = arith.constant dense<0.000000e+00> : vector<32x4xf32>
    %4 = tpu.matmul %0, %3, %cst {dimension_numbers = #tpu.dot_dimension_numbers<[1], [0], [0], [1], [0, 0, 1, 1], [], []>} : vector<32x16xbf16>, vector<16x4xbf16>, vector<32x4xf32> -> vector<32x4xf32>
    %c0_7 = arith.constant 0 : index
    %c0_8 = arith.constant 0 : index
    %5 = vector.load %arg5[%c0_7, %c0_8] : memref<1x4xf32, #tpu.memory_space<vmem>>, vector<1x4xf32>
    %6 = vector.broadcast %5 : vector<1x4xf32> to vector<32x4xf32>
    %7 = arith.addf %4, %6 : vector<32x4xf32>
    %cst_9 = arith.constant dense<0xFF800000> : vector<32xf32>
    %8 = vector.multi_reduction <maximumf>, %7, %cst_9 [1] : vector<32x4xf32> to vector<32xf32>
    %9 = vector.shape_cast %8 : vector<32xf32> to vector<32x1xf32>
    %10 = vector.broadcast %9 : vector<32x1xf32> to vector<32x4xf32>
    %11 = arith.subf %7, %10 : vector<32x4xf32>
    %12 = math.exp %11 : vector<32x4xf32>
    %cst_10 = arith.constant dense<0.000000e+00> : vector<32xf32>
    %13 = vector.multi_reduction <add>, %12, %cst_10 [1] : vector<32x4xf32> to vector<32xf32>
    %14 = vector.shape_cast %13 : vector<32xf32> to vector<32x1xf32>
    %15 = vector.broadcast %14 : vector<32x1xf32> to vector<32x4xf32>
    %16 = arith.divf %12, %15 : vector<32x4xf32>
    %17 = tpu.iota {dimensions = array<i32: 1>} : vector<32x4xi32>
    %18 = arith.sitofp %17 : vector<32x4xi32> to vector<32x4xf32>
    %cst_11 = arith.constant 0.000000e+00 : f32
    %19 = vector.broadcast %cst_11 : f32 to vector<32x4xf32>
    %cst_12 = arith.constant dense<0xFF800000> : vector<32xf32>
    %20 = vector.multi_reduction <maximumf>, %16, %cst_12 [1] : vector<32x4xf32> to vector<32xf32>
    %21 = vector.shape_cast %20 : vector<32xf32> to vector<32x1xf32>
    %22 = vector.broadcast %21 : vector<32x1xf32> to vector<32x4xf32>
    %23 = arith.cmpf oge, %16, %22 : vector<32x4xf32>
    %cst_13 = arith.constant 4.000000e+00 : f32
    %24 = vector.broadcast %cst_13 : f32 to vector<32x4xf32>
    %25 = arith.select %23, %18, %24 : vector<32x4xi1>, vector<32x4xf32>
    %cst_14 = arith.constant dense<0x7F800000> : vector<32xf32>
    %26 = vector.multi_reduction <minimumf>, %25, %cst_14 [1] : vector<32x4xf32> to vector<32xf32>
    %27 = vector.shape_cast %26 : vector<32xf32> to vector<32x1xf32>
    %28 = vector.broadcast %27 : vector<32x1xf32> to vector<32x4xf32>
    %29 = arith.cmpf oeq, %18, %28 : vector<32x4xf32>
    %cst_15 = arith.constant 1.000000e+00 : f32
    %cst_16 = arith.constant 0.000000e+00 : f32
    %30 = vector.broadcast %cst_15 : f32 to vector<32x4xf32>
    %31 = vector.broadcast %cst_16 : f32 to vector<32x4xf32>
    %32 = arith.select %29, %30, %31 : vector<32x4xi1>, vector<32x4xf32>
    %33 = arith.addf %19, %32 : vector<32x4xf32>
    %cst_17 = arith.constant -1.000000e+30 : f32
    %34 = vector.broadcast %cst_17 : f32 to vector<32x4xf32>
    %35 = arith.select %29, %34, %16 : vector<32x4xi1>, vector<32x4xf32>
    %cst_18 = arith.constant dense<0xFF800000> : vector<32xf32>
    %36 = vector.multi_reduction <maximumf>, %35, %cst_18 [1] : vector<32x4xf32> to vector<32xf32>
    %37 = vector.shape_cast %36 : vector<32xf32> to vector<32x1xf32>
    %38 = vector.broadcast %37 : vector<32x1xf32> to vector<32x4xf32>
    %39 = arith.cmpf oge, %35, %38 : vector<32x4xf32>
    %cst_19 = arith.constant 4.000000e+00 : f32
    %40 = vector.broadcast %cst_19 : f32 to vector<32x4xf32>
    %41 = arith.select %39, %18, %40 : vector<32x4xi1>, vector<32x4xf32>
    %cst_20 = arith.constant dense<0x7F800000> : vector<32xf32>
    %42 = vector.multi_reduction <minimumf>, %41, %cst_20 [1] : vector<32x4xf32> to vector<32xf32>
    %43 = vector.shape_cast %42 : vector<32xf32> to vector<32x1xf32>
    %44 = vector.broadcast %43 : vector<32x1xf32> to vector<32x4xf32>
    %45 = arith.cmpf oeq, %18, %44 : vector<32x4xf32>
    %cst_21 = arith.constant 1.000000e+00 : f32
    %cst_22 = arith.constant 0.000000e+00 : f32
    %46 = vector.broadcast %cst_21 : f32 to vector<32x4xf32>
    %47 = vector.broadcast %cst_22 : f32 to vector<32x4xf32>
    %48 = arith.select %45, %46, %47 : vector<32x4xi1>, vector<32x4xf32>
    %49 = arith.addf %33, %48 : vector<32x4xf32>
    %50 = arith.mulf %16, %49 : vector<32x4xf32>
    %cst_23 = arith.constant dense<0.000000e+00> : vector<32xf32>
    %51 = vector.multi_reduction <add>, %50, %cst_23 [1] : vector<32x4xf32> to vector<32xf32>
    %52 = vector.shape_cast %51 : vector<32xf32> to vector<32x1xf32>
    %cst_24 = arith.constant 9.99999996E-13 : f32
    %53 = vector.broadcast %cst_24 : f32 to vector<32x1xf32>
    %54 = arith.maximumf %52, %53 : vector<32x1xf32>
    %55 = vector.broadcast %54 : vector<32x1xf32> to vector<32x4xf32>
    %56 = arith.divf %50, %55 : vector<32x4xf32>
    %cst_25 = arith.constant dense<0.000000e+00> : vector<4xf32>
    %57 = vector.multi_reduction <add>, %16, %cst_25 [0] : vector<32x4xf32> to vector<4xf32>
    %58 = vector.shape_cast %57 : vector<4xf32> to vector<1x4xf32>
    %cst_26 = arith.constant dense<0.000000e+00> : vector<4xf32>
    %59 = vector.multi_reduction <add>, %49, %cst_26 [0] : vector<32x4xf32> to vector<4xf32>
    %60 = vector.shape_cast %59 : vector<4xf32> to vector<1x4xf32>
    %61 = arith.mulf %58, %60 : vector<1x4xf32>
    %cst_27 = arith.constant dense<0.000000e+00> : vector<1xf32>
    %62 = vector.multi_reduction <add>, %61, %cst_27 [1] : vector<1x4xf32> to vector<1xf32>
    %63 = vector.shape_cast %62 : vector<1xf32> to vector<1x1xf32>
    %cst_28 = arith.constant 3.906250e-05 : f32
    %64 = vector.broadcast %cst_28 : f32 to vector<1x1xf32>
    %65 = arith.mulf %64, %63 : vector<1x1xf32>
    %c0_29 = arith.constant 0 : index
    %c0_30 = arith.constant 0 : index
    %66 = vector.load %arg15[%c0_29, %c0_30] : memref<1x1xf32, #tpu.memory_space<vmem>>, vector<1x1xf32>
    tpu.vector_store %arg15[%c0_29, %c0_30], %65 {strides = array<i32>} : memref<1x1xf32, #tpu.memory_space<vmem>>, vector<1x1xf32>,
    %cst_31 = arith.constant dense<0.000000e+00> : vector<32x16xf32>
    %67 = tpu.matmul %1, %0, %cst_31 {dimension_numbers = #tpu.dot_dimension_numbers<[1], [0], [0], [1], [0, 0, 1, 1], [], []>} : vector<32x32xbf16>, vector<32x16xbf16>, vector<32x16xf32> -> vector<32x16xf32>
    %68 = arith.truncf %67 : vector<32x16xf32> to vector<32x16xbf16>
    %c0_32 = arith.constant 0 : index
    %c0_33 = arith.constant 0 : index
    %69 = vector.load %arg6[%c0_32, %c0_33] : memref<16x128xbf16, #tpu.memory_space<vmem>>, vector<16x128xbf16>
    %cst_34 = arith.constant dense<0.000000e+00> : vector<32x128xf32>
    %70 = tpu.matmul %68, %69, %cst_34 {dimension_numbers = #tpu.dot_dimension_numbers<[1], [0], [0], [1], [0, 0, 1, 1], [], []>} : vector<32x16xbf16>, vector<16x128xbf16>, vector<32x128xf32> -> vector<32x128xf32>
    %c0_35 = arith.constant 0 : index
    %c0_36 = arith.constant 0 : index
    %71 = vector.load %arg7[%c0_35, %c0_36] : memref<1x128xf32, #tpu.memory_space<vmem>>, vector<1x128xf32>
    %72 = vector.broadcast %71 : vector<1x128xf32> to vector<32x128xf32>
    %73 = arith.addf %70, %72 : vector<32x128xf32>
    %cst_37 = arith.constant 0.000000e+00 : f32
    %74 = vector.broadcast %cst_37 : f32 to vector<32x128xf32>
    %75 = arith.maximumf %73, %74 : vector<32x128xf32>
    %76 = arith.truncf %75 : vector<32x128xf32> to vector<32x128xbf16>
    %cst_38 = arith.constant dense<0.000000e+00> : vector<32x128xf32>
    %77 = tpu.matmul %1, %76, %cst_38 {dimension_numbers = #tpu.dot_dimension_numbers<[1], [0], [0], [1], [0, 0, 1, 1], [], []>} : vector<32x32xbf16>, vector<32x128xbf16>, vector<32x128xf32> -> vector<32x128xf32>
    %78 = arith.truncf %77 : vector<32x128xf32> to vector<32x128xbf16>
    %c0_39 = arith.constant 0 : index
    %c0_40 = arith.constant 0 : index
    %c0_41 = arith.constant 0 : index
    %79 = vector.load %arg8[%c0_39, %c0_40, %c0_41] : memref<3x128x128xbf16, #tpu.memory_space<vmem>>, vector<1x128x128xbf16>
    %80 = vector.shape_cast %79 : vector<1x128x128xbf16> to vector<128x128xbf16>
    %cst_42 = arith.constant dense<0.000000e+00> : vector<32x128xf32>
    %81 = tpu.matmul %78, %80, %cst_42 {dimension_numbers = #tpu.dot_dimension_numbers<[1], [0], [0], [1], [0, 0, 1, 1], [], []>} : vector<32x128xbf16>, vector<128x128xbf16>, vector<32x128xf32> -> vector<32x128xf32>
    %c0_43 = arith.constant 0 : index
    %c0_44 = arith.constant 0 : index
    %c0_45 = arith.constant 0 : index
    %82 = vector.load %arg9[%c0_43, %c0_44, %c0_45] : memref<3x1x128xf32, #tpu.memory_space<vmem>>, vector<1x1x128xf32>
    %83 = vector.shape_cast %82 : vector<1x1x128xf32> to vector<1x128xf32>
    %84 = vector.broadcast %83 : vector<1x128xf32> to vector<32x128xf32>
    %85 = arith.addf %81, %84 : vector<32x128xf32>
    %cst_46 = arith.constant 0.000000e+00 : f32
    %86 = vector.broadcast %cst_46 : f32 to vector<32x128xf32>
    %87 = arith.maximumf %85, %86 : vector<32x128xf32>
    %cst_47 = arith.constant 1.000000e+00 : f32
    %88 = vector.broadcast %cst_47 : f32 to vector<1x128xf32>
    %89 = arith.cmpf oge, %2, %88 : vector<1x128xf32>
    %90 = vector.shape_cast %89 : vector<1x128xi1> to vector<1x128xi1>
    %91 = vector.broadcast %90 : vector<1x128xi1> to vector<32x128xi1>
    %92 = arith.select %91, %87, %75 : vector<32x128xi1>, vector<32x128xf32>
    %93 = arith.truncf %92 : vector<32x128xf32> to vector<32x128xbf16>
    %cst_48 = arith.constant dense<0.000000e+00> : vector<32x128xf32>
    %94 = tpu.matmul %1, %93, %cst_48 {dimension_numbers = #tpu.dot_dimension_numbers<[1], [0], [0], [1], [0, 0, 1, 1], [], []>} : vector<32x32xbf16>, vector<32x128xbf16>, vector<32x128xf32> -> vector<32x128xf32>
    %95 = arith.truncf %94 : vector<32x128xf32> to vector<32x128xbf16>
    %c1 = arith.constant 1 : index
    %c0_49 = arith.constant 0 : index
    %c0_50 = arith.constant 0 : index
    %96 = vector.load %arg8[%c1, %c0_49, %c0_50] : memref<3x128x128xbf16, #tpu.memory_space<vmem>>, vector<1x128x128xbf16>
    %97 = vector.shape_cast %96 : vector<1x128x128xbf16> to vector<128x128xbf16>
    %cst_51 = arith.constant dense<0.000000e+00> : vector<32x128xf32>
    %98 = tpu.matmul %95, %97, %cst_51 {dimension_numbers = #tpu.dot_dimension_numbers<[1], [0], [0], [1], [0, 0, 1, 1], [], []>} : vector<32x128xbf16>, vector<128x128xbf16>, vector<32x128xf32> -> vector<32x128xf32>
    %c1_52 = arith.constant 1 : index
    %c0_53 = arith.constant 0 : index
    %c0_54 = arith.constant 0 : index
    %99 = vector.load %arg9[%c1_52, %c0_53, %c0_54] : memref<3x1x128xf32, #tpu.memory_space<vmem>>, vector<1x1x128xf32>
    %100 = vector.shape_cast %99 : vector<1x1x128xf32> to vector<1x128xf32>
    %101 = vector.broadcast %100 : vector<1x128xf32> to vector<32x128xf32>
    %102 = arith.addf %98, %101 : vector<32x128xf32>
    %cst_55 = arith.constant 0.000000e+00 : f32
    %103 = vector.broadcast %cst_55 : f32 to vector<32x128xf32>
    %104 = arith.maximumf %102, %103 : vector<32x128xf32>
    %cst_56 = arith.constant 2.000000e+00 : f32
    %105 = vector.broadcast %cst_56 : f32 to vector<1x128xf32>
    %106 = arith.cmpf oge, %2, %105 : vector<1x128xf32>
    %107 = vector.shape_cast %106 : vector<1x128xi1> to vector<1x128xi1>
    %108 = vector.broadcast %107 : vector<1x128xi1> to vector<32x128xi1>
    %109 = arith.select %108, %104, %92 : vector<32x128xi1>, vector<32x128xf32>
    %110 = arith.truncf %109 : vector<32x128xf32> to vector<32x128xbf16>
    %cst_57 = arith.constant dense<0.000000e+00> : vector<32x128xf32>
    %111 = tpu.matmul %1, %110, %cst_57 {dimension_numbers = #tpu.dot_dimension_numbers<[1], [0], [0], [1], [0, 0, 1, 1], [], []>} : vector<32x32xbf16>, vector<32x128xbf16>, vector<32x128xf32> -> vector<32x128xf32>
    %112 = arith.truncf %111 : vector<32x128xf32> to vector<32x128xbf16>
    %c2 = arith.constant 2 : index
    %c0_58 = arith.constant 0 : index
    %c0_59 = arith.constant 0 : index
    %113 = vector.load %arg8[%c2, %c0_58, %c0_59] : memref<3x128x128xbf16, #tpu.memory_space<vmem>>, vector<1x128x128xbf16>
    %114 = vector.shape_cast %113 : vector<1x128x128xbf16> to vector<128x128xbf16>
    %cst_60 = arith.constant dense<0.000000e+00> : vector<32x128xf32>
    %115 = tpu.matmul %112, %114, %cst_60 {dimension_numbers = #tpu.dot_dimension_numbers<[1], [0], [0], [1], [0, 0, 1, 1], [], []>} : vector<32x128xbf16>, vector<128x128xbf16>, vector<32x128xf32> -> vector<32x128xf32>
    %c2_61 = arith.constant 2 : index
    %c0_62 = arith.constant 0 : index
    %c0_63 = arith.constant 0 : index
    %116 = vector.load %arg9[%c2_61, %c0_62, %c0_63] : memref<3x1x128xf32, #tpu.memory_space<vmem>>, vector<1x1x128xf32>
    %117 = vector.shape_cast %116 : vector<1x1x128xf32> to vector<1x128xf32>
    %118 = vector.broadcast %117 : vector<1x128xf32> to vector<32x128xf32>
    %119 = arith.addf %115, %118 : vector<32x128xf32>
    %cst_64 = arith.constant 0.000000e+00 : f32
    %120 = vector.broadcast %cst_64 : f32 to vector<32x128xf32>
    %121 = arith.maximumf %119, %120 : vector<32x128xf32>
    %cst_65 = arith.constant 3.000000e+00 : f32
    %122 = vector.broadcast %cst_65 : f32 to vector<1x128xf32>
    %123 = arith.cmpf oge, %2, %122 : vector<1x128xf32>
    %124 = vector.shape_cast %123 : vector<1x128xi1> to vector<1x128xi1>
    %125 = vector.broadcast %124 : vector<1x128xi1> to vector<32x128xi1>
    %126 = arith.select %125, %121, %109 : vector<32x128xi1>, vector<32x128xf32>
    %cst_66 = arith.constant 0.000000e+00 : f32
    %127 = vector.broadcast %cst_66 : f32 to vector<32x128xf32>
    %cst_67 = arith.constant 0.000000e+00 : f32
    %128 = vector.broadcast %cst_67 : f32 to vector<1x128xf32>
    %129 = arith.cmpf oeq, %2, %128 : vector<1x128xf32>
    %130 = vector.shape_cast %129 : vector<1x128xi1> to vector<1x128xi1>
    %131 = vector.broadcast %130 : vector<1x128xi1> to vector<32x128xi1>
    %132 = vector.extract_strided_slice %56 {offsets = [0, 0], sizes = [32, 1], strides = [1, 1]} : vector<32x4xf32> to vector<32x1xf32>
    %133 = vector.shape_cast %132 : vector<32x1xf32> to vector<32x1xf32>
    %134 = vector.broadcast %133 : vector<32x1xf32> to vector<32x128xf32>
    %135 = arith.select %131, %134, %127 : vector<32x128xi1>, vector<32x128xf32>
    %cst_68 = arith.constant 1.000000e+00 : f32
    %136 = vector.broadcast %cst_68 : f32 to vector<1x128xf32>
    %137 = arith.cmpf oeq, %2, %136 : vector<1x128xf32>
    %138 = vector.shape_cast %137 : vector<1x128xi1> to vector<1x128xi1>
    %139 = vector.broadcast %138 : vector<1x128xi1> to vector<32x128xi1>
    %140 = vector.extract_strided_slice %56 {offsets = [0, 1], sizes = [32, 1], strides = [1, 1]} : vector<32x4xf32> to vector<32x1xf32>
    %141 = vector.shape_cast %140 : vector<32x1xf32> to vector<32x1xf32>
    %142 = vector.broadcast %141 : vector<32x1xf32> to vector<32x128xf32>
    %143 = arith.select %139, %142, %135 : vector<32x128xi1>, vector<32x128xf32>
    %cst_69 = arith.constant 2.000000e+00 : f32
    %144 = vector.broadcast %cst_69 : f32 to vector<1x128xf32>
    %145 = arith.cmpf oeq, %2, %144 : vector<1x128xf32>
    %146 = vector.shape_cast %145 : vector<1x128xi1> to vector<1x128xi1>
    %147 = vector.broadcast %146 : vector<1x128xi1> to vector<32x128xi1>
    %148 = vector.extract_strided_slice %56 {offsets = [0, 2], sizes = [32, 1], strides = [1, 1]} : vector<32x4xf32> to vector<32x1xf32>
    %149 = vector.shape_cast %148 : vector<32x1xf32> to vector<32x1xf32>
    %150 = vector.broadcast %149 : vector<32x1xf32> to vector<32x128xf32>
    %151 = arith.select %147, %150, %143 : vector<32x128xi1>, vector<32x128xf32>
    %cst_70 = arith.constant 3.000000e+00 : f32
    %152 = vector.broadcast %cst_70 : f32 to vector<1x128xf32>
    %153 = arith.cmpf oeq, %2, %152 : vector<1x128xf32>
    %154 = vector.shape_cast %153 : vector<1x128xi1> to vector<1x128xi1>
    %155 = vector.broadcast %154 : vector<1x128xi1> to vector<32x128xi1>
    %156 = vector.extract_strided_slice %56 {offsets = [0, 3], sizes = [32, 1], strides = [1, 1]} : vector<32x4xf32> to vector<32x1xf32>
    %157 = vector.shape_cast %156 : vector<32x1xf32> to vector<32x1xf32>
    %158 = vector.broadcast %157 : vector<32x1xf32> to vector<32x128xf32>
    %159 = arith.select %155, %158, %151 : vector<32x128xi1>, vector<32x128xf32>
    %160 = arith.mulf %126, %159 : vector<32x128xf32>
    %c0_71 = arith.constant 0 : index
    %c0_72 = arith.constant 0 : index
    %161 = vector.load %arg2[%c0_71, %c0_72] : memref<2x32xbf16, #tpu.memory_space<vmem>>, vector<2x32xbf16>
    %162 = arith.truncf %160 : vector<32x128xf32> to vector<32x128xbf16>
    %cst_73 = arith.constant dense<0.000000e+00> : vector<2x128xf32>
    %163 = tpu.matmul %161, %162, %cst_73 {dimension_numbers = #tpu.dot_dimension_numbers<[1], [0], [0], [1], [0, 0, 1, 1], [], []>} : vector<2x32xbf16>, vector<32x128xbf16>, vector<2x128xf32> -> vector<2x128xf32>
    %164 = arith.truncf %163 : vector<2x128xf32> to vector<2x128xbf16>
    %c0_74 = arith.constant 0 : index
    %c0_75 = arith.constant 0 : index
    %165 = vector.load %arg10[%c0_74, %c0_75] : memref<128x32xbf16, #tpu.memory_space<vmem>>, vector<128x32xbf16>
    %cst_76 = arith.constant dense<0.000000e+00> : vector<2x32xf32>
    %166 = tpu.matmul %164, %165, %cst_76 {dimension_numbers = #tpu.dot_dimension_numbers<[1], [0], [0], [1], [0, 0, 1, 1], [], []>} : vector<2x128xbf16>, vector<128x32xbf16>, vector<2x32xf32> -> vector<2x32xf32>
    %c0_77 = arith.constant 0 : index
    %c0_78 = arith.constant 0 : index
    %167 = vector.load %arg11[%c0_77, %c0_78] : memref<1x32xf32, #tpu.memory_space<vmem>>, vector<1x32xf32>
    %168 = vector.broadcast %167 : vector<1x32xf32> to vector<2x32xf32>
    %169 = arith.addf %166, %168 : vector<2x32xf32>
    %cst_79 = arith.constant 0.000000e+00 : f32
    %170 = vector.broadcast %cst_79 : f32 to vector<2x32xf32>
    %171 = arith.maximumf %169, %170 : vector<2x32xf32>
    %172 = arith.truncf %171 : vector<2x32xf32> to vector<2x32xbf16>
    %c0_80 = arith.constant 0 : index
    %c0_81 = arith.constant 0 : index
    %173 = vector.load %arg12[%c0_80, %c0_81] : memref<32x8xbf16, #tpu.memory_space<vmem>>, vector<32x8xbf16>
    %cst_82 = arith.constant dense<0.000000e+00> : vector<2x8xf32>
    %174 = tpu.matmul %172, %173, %cst_82 {dimension_numbers = #tpu.dot_dimension_numbers<[1], [0], [0], [1], [0, 0, 1, 1], [], []>} : vector<2x32xbf16>, vector<32x8xbf16>, vector<2x8xf32> -> vector<2x8xf32>
    %c0_83 = arith.constant 0 : index
    %c0_84 = arith.constant 0 : index
    %175 = vector.load %arg13[%c0_83, %c0_84] : memref<1x8xf32, #tpu.memory_space<vmem>>, vector<1x8xf32>
    %176 = vector.broadcast %175 : vector<1x8xf32> to vector<2x8xf32>
    %177 = arith.addf %174, %176 : vector<2x8xf32>
    %c0_85 = arith.constant 0 : index
    %c0_86 = arith.constant 0 : index
    %178 = vector.load %arg14[%c0_85, %c0_86] : memref<2x8xf32, #tpu.memory_space<vmem>>, vector<2x8xf32>
    tpu.vector_store %arg14[%c0_85, %c0_86], %177 {strides = array<i32>} : memref<2x8xf32, #tpu.memory_space<vmem>>, vector<2x8xf32>,
    return
  }
}

</mosaic_0001>

<bundles_post_ra>
// kernel: tpu_custom_call.1
= control target key start
LH: loop header
LB: loop body
LE: loop exit
PB: predicated region body
PF: predicated region fallthrough
CT: control target
= control target key end

     0   :  { %21 = vsyncpa [#allocation3], 0  ;;  %s2433_s0 = inlined_call_operand.vmem [shape: bf16[32,16], index: 0, kind: input, shape index: {}]   ;;  %s2434_s1 = inlined_call_operand.vmem [shape: bf16[32,32], index: 1, kind: input, shape index: {}]   ;;  %s2435_s2 = inlined_call_operand.vmem [shape: bf16[2,32], index: 2, kind: input, shape index: {}]   ;;  %s2436_s3 = inlined_call_operand.vmem [shape: f32[1,128], index: 3, kind: input, shape index: {}]   ;;  %s2437_s4 = inlined_call_operand.vmem [shape: bf16[16,4], index: 4, kind: input, shape index: {}]   ;;  %s2438_s5 = inlined_call_operand.vmem [shape: f32[1,4], index: 5, kind: input, shape index: {}]   ;;  %s2439_s6 = inlined_call_operand.vmem [shape: bf16[16,128], index: 6, kind: input, shape index: {}]   ;;  %s2440_s7 = inlined_call_operand.vmem [shape: f32[1,128], index: 7, kind: input, shape index: {}]   ;;  %s2441_s8 = inlined_call_operand.hbm [shape: bf16[3,128,128], index: 8, kind: input, shape index: {}]   ;;  %s2442_s9 = inlined_call_operand.vmem [shape: f32[3,1,128], index: 9, kind: input, shape index: {}]   ;;  %s2443_s10 = inlined_call_operand.vmem [shape: bf16[128,32], index: 10, kind: input, shape index: {}]   ;;  %s2444_s11 = inlined_call_operand.vmem [shape: f32[1,32], index: 11, kind: input, shape index: {}]   ;;  %s2445_s12 = inlined_call_operand.vmem [shape: bf16[32,8], index: 12, kind: input, shape index: {}]   ;;  %s2446_s13 = inlined_call_operand.vmem [shape: f32[1,8], index: 13, kind: input, shape index: {}]   ;;  %s2447_s14 = inlined_call_operand.hbm [shape: f32[2,8], index: 14, kind: output, shape index: {0}]   ;;  %s2448_s15 = inlined_call_operand.hbm [shape: f32[1,1], index: 15, kind: output, shape index: {1}]  }
   0x1   :  { %22 = vsyncpa [#allocation4], 0 }
   0x2   :  { %23 = vsyncpa [#allocation7], 0  ;;  %s1873_s18 = smov [#allocation2]   ;;  %s1801_s22 = scalar_lea.hbm %s2441_s8, 3072 }
   0x3   :  { %s45_s19 = sshll.u32 %s1873_s18, 4  ;;  %p1802_p0 = scmp.ne.s32.totalorder %s2441_s8, %s1801_s22  ;;  %s46_s19 = int_to_ptr.vmem [resolvable:$true] %s45_s19 }
   0x4   :  { %p1805_p1 = scmp.lt.u32.totalorder %s1801_s22, %s2441_s8 }
   0x6   :  { %p1807_p2 = pnand %p1805_p1, %p1802_p0 }
   0x8   :  { %1810 = shalt.err (!%p1807_p2)
}
   0x9   :  { %s1811_s27 = scalar_lea.vmem %s46_s19, 3072  ;;  %p1816_p4 = scmp.lt.s32.totalorder %s46_s19, %s46_s19 }
   0xa   :  { %p1812_p3 = scmp.ne.s32.totalorder %s46_s19, %s1811_s27  ;;  %p1817_p5 = scmp.lt.s32.totalorder %s1811_s27, %s1811_s27 }
   0xc   :  { %p1818_p6 = por %p1817_p5, %p1816_p4 }
   0xe   :  { %p1819_p7 = pnand %p1818_p6, %p1812_p3 }
  0x10   :  { %1822 = shalt.err (!%p1819_p7)
}
  0x11   :  { %s1874_s28 = smov 64   ;;  %s1875_s29 = smov 4  }
  0x12   :  { %51 = dma.hbm_to_vmem [thread:$0]  %s2441_s8, 3072, %s46_s19, [#allocation3], %s1874_s28, %s1874_s28, %s1875_s29  }
  0x13   :  { %1867 = dma.done.wait [#allocation3], 3072  }
  0x14   :  { %1868 = vsyncadd [#allocation3], 4294964224  ;;  %v1737_v0 = vld [vmem:[%s2437_s4] sm:$0xff]   ;;  %vm100_vm0 = vcmask 130048   ;;  %v1739_v2 = vld [vmem:[%s2433_s0 + $0x8] sm:$0xff]   ;;  %vm369_vm1 = vcmask 261120  }
  0x15   :  { %v1738_v1 = vld [vmem:[%s2433_s0] sm:$0xff]   ;;  %1572 = vmatprep.subr.bf16.mxu0 %v1737_v0  ;;  %v1996_v4 = vld [vmem:[%s2434_s1 + $0x8] sm:$0xff]   ;;  %vm156_vm2 = vcmask 31744   ;;  %v1745_v47 = vld [vmem:[#allocation2 + $0x10] sm:$0xff]   ;;  %s1882_s16 = smov [#allocation6]  }
  0x16   :  { %1578 = vmatprep.subr.bf16.mxu1 %v1738_v1  ;;  %1573 = vmatpush3.bf16.msra.mxu0 %v1737_v0  ;;  %v1988_v3 = vld [vmem:[%s2434_s1] sm:$0xff]   ;;  %v1744_v46 = vld [vmem:[#allocation2 + $0x8] sm:$0xff]   ;;  %v1746_v48 = vld [vmem:[#allocation2 + $0x18] sm:$0xff]   ;;  %s1429_s17 = sshll.u32 %s1882_s16, 4  ;;  %s1430_s17 = int_to_ptr.vmem [resolvable:$true] %s1429_s17 }
  0x17   :  { %1579 = vmatpush3.bf16.msra.mxu1 %v1738_v1  ;;  %1574 = vmatprep.mubr.msk.bf16.mxu0 %vm100_vm0, %v1738_v1  ;;  %v1742_v5 = vld [vmem:[%s2439_s6] sm:$0xff]   ;;  %v1748_v50 = vld [vmem:[#allocation2 + $0x28] sm:$0xff]   ;;  %v1749_v51 = vld [vmem:[#allocation2 + $0x30] sm:$0xff]   ;;  %p1828_p9 = scmp.lt.s32.totalorder %s1430_s17, %s1430_s17 }
  0x18   :  { %1580 = vmatprep.subr.bf16.mxu1 %v1739_v2  ;;  %1582 = vmatprep.mubr.msk.bf16.mxu1 %vm369_vm1, %v1988_v3  ;;  %v1442_v6 = vld [vmem:[%s2438_s5] ss:$0 sm:$0xff] }
  0x19   :  { %1575 = vmatmul.mubr.msk.bf16.vlgmr.msra.gmra.mrb[0].mxu0 %vm100_vm0, %v1739_v2  ;;  %1586 = vmatprep.subr.bf16.mxu0 %v1742_v5  ;;  %v1743_v45 = vld [vmem:[#allocation2] sm:$0xff]  }
  0x1a   :  { %1587 = vmatpush3.bf16.msra.mxu0 %v1742_v5  ;;  %v1747_v49 = vld [vmem:[#allocation2 + $0x20] sm:$0xff]  }
  0x1b   :  { %1581 = vmatpush3.bf16.msra.mxu1 %v1739_v2  ;;  %1600 = vmatprep.subr.bf16.mxu0 %v1743_v45  ;;  %v1452_v52 = vld [vmem:[%s2440_s7] ss:$0 sm:$0xff] }
  0x1e   :  { %1583 = vmatmul.mubr.msk.bf16.vlgmr.msra.gmra.mrb[0].mxu1 %vm369_vm1, %v1996_v4 }
  0x1f   :  { %1596 = vmatprep.mubr.msk.bf16.mxu1 %vm369_vm1, %v1988_v3 }
  0xec   :  { %v1576_v7 = vpop.f32.mrb[0].mxu0 }
  0xed   :  { %v150_v8 = vadd.f32 %v1576_v7, %v1442_v6  ;;  %v141_v9 = vpop.f32.mrb[1].mxu0 }
  0xee   :  { %v142_v10 = vadd.f32 %v1442_v6, %v141_v9  ;;  %v1577_v11 = vpop.f32.mrb[2].mxu0 }
  0xef   :  { %v153_v12 = vadd.f32 %v1577_v11, %v1442_v6  ;;  %v144_v13 = vpop.f32.mrb[3].mxu0  ;;  %v163_v14 = vsel %vm156_vm2, %v150_v8, -inf }
  0xf0   :  { %v145_v15 = vadd.f32 %v1442_v6, %v144_v13  ;;  %v157_v16 = vsel %vm156_vm2, %v142_v10, -inf  ;;  %164 = vmax.xlane.f32.xlu1 %v163_v14 }
  0xf1   :  { %v1584_v17 = vpop.f32.mrb[0].mxu1  ;;  %158 = vmax.xlane.f32.xlu0 %v157_v16  ;;  %v166_v18 = vsel %vm156_vm2, %v153_v12, -inf }
  0xf2   :  { %v410_v19 = vpop.f32.mrb[1].mxu1  ;;  %v160_v20 = vsel %vm156_vm2, %v145_v15, -inf }
  0xf3   :  { %v1585_v21 = vpop.f32.mrb[2].mxu1 }
  0xf4   :  { %v426_v22 = vpack.c.bf16 %v1585_v21, %v1584_v17  ;;  %v413_v23 = vpop.f32.mrb[3].mxu1  ;;  %167 = vmax.xlane.f32.xlu1 %v166_v18 }
  0xf5   :  { %v425_v24 = vpack.c.bf16 %v413_v23, %v410_v19  ;;  %161 = vmax.xlane.f32.xlu0 %v160_v20  ;;  %v1750_v20 = vld [vmem:[#allocation2 + $0x38] sm:$0xff]  }
  0xf7   :  { %1588 = vmatprep.mubr.msk.bf16.mxu0 %vm100_vm0, %v425_v24 }
  0xf8   :  { %1589 = vmatmul.mubr.msk.bf16.vlgmr.msra.gmra.mrb[4].mxu0 %vm100_vm0, %v426_v22  ;;  %v201_v22 = vlaneseq }
  0xf9   :  { %1601 = vmatpush3.bf16.msra.mxu0 %v1743_v45 }
  0xfa   :  { %1602 = vmatprep.subr.bf16.mxu0 %v1744_v46 }
  0xfd   :  { %1603 = vmatpush3.bf16.msra.mxu0 %v1744_v46 }
  0xfe   :  { %1604 = vmatprep.subr.bf16.mxu0 %v1745_v47 }
 0x101   :  { %1605 = vmatpush3.bf16.msra.mxu0 %v1745_v47 }
 0x102   :  { %1606 = vmatprep.subr.bf16.mxu0 %v1746_v48 }
 0x105   :  { %1607 = vmatpush3.bf16.msra.mxu0 %v1746_v48 }
 0x106   :  { %1608 = vmatprep.subr.bf16.mxu0 %v1747_v49 }
 0x109   :  { %1609 = vmatpush3.bf16.msra.mxu0 %v1747_v49 }
 0x10a   :  { %1610 = vmatprep.subr.bf16.mxu0 %v1748_v50 }
 0x10d   :  { %1611 = vmatpush3.bf16.msra.mxu0 %v1748_v50 }
 0x10e   :  { %1612 = vmatprep.subr.bf16.mxu0 %v1749_v51 }
 0x111   :  { %1613 = vmatpush3.bf16.msra.mxu0 %v1749_v51 }
 0x112   :  { %1614 = vmatprep.subr.bf16.mxu0 %v1750_v20 }
 0x115   :  { %1615 = vmatpush3.bf16.msra.mxu0 %v1750_v20 }
 0x17d   :  { %v165_v25 = vpop.xlane.xlu1 %164 }
 0x17e   :  { %v159_v26 = vpop.xlane.xlu0 %158  ;;  %v171_v27 = vsub.f32 %v150_v8, %v165_v25 }
 0x17f   :  { %v169_v28 = vsub.f32 %v142_v10, %v159_v26  ;;  %v202_v26 = vand.u32 127, %v201_v22 }
 0x180   :  { %v177_v29 = vmul.f32 1.442695, %v171_v27 }
 0x181   :  { %v173_v30 = vmul.f32 1.442695, %v169_v28  ;;  %v168_v31 = vpop.xlane.xlu1 %167 }
 0x182   :  { %1777 = vpow2.f32 %v177_v29  ;;  %v162_v32 = vpop.xlane.xlu0 %161  ;;  %v172_v33 = vsub.f32 %v153_v12, %v168_v31 }
 0x183   :  { %1779 = vpow2.f32 %v173_v30  ;;  %v170_v34 = vsub.f32 %v145_v15, %v162_v32  ;;  %v2070_v30 = vcvt.s32.f32 %v202_v26 }
 0x184   :  { %v179_v35 = vmul.f32 1.442695, %v172_v33 }
 0x185   :  { %v175_v36 = vmul.f32 1.442695, %v170_v34 }
 0x186   :  { %1781 = vpow2.f32 %v179_v35 }
 0x187   :  { %1783 = vpow2.f32 %v175_v36 }
 0x18c   :  { %v2015_v37 = vpop.eup %1777 }
 0x18d   :  { %v1780_v38 = vpop.eup %1779  ;;  %v187_v41 = vsel %vm156_vm2, %v2015_v37, 0.0 }
 0x18e   :  { %v181_v39 = vsel %vm156_vm2, %v1780_v38, 0.0 }
 0x18f   :  { %182 = vadd.xlane.f32.xlu0 %v181_v39 }
 0x190   :  { %v2018_v40 = vpop.eup %1781 }
 0x191   :  { %v1784_v42 = vpop.eup %1783  ;;  %v190_v44 = vsel %vm156_vm2, %v2018_v40, 0.0 }
 0x192   :  { %v184_v43 = vsel %vm156_vm2, %v1784_v42, 0.0 }
 0x193   :  { %188 = vadd.xlane.f32.xlu0 %v187_v41  ;;  %185 = vadd.xlane.f32.xlu1 %v184_v43 }
 0x197   :  { %191 = vadd.xlane.f32.xlu1 %v190_v44 }
 0x1cb   :  { %v1590_v53 = vpop.f32.mrb[4].mxu0 }
 0x1cc   :  { %v482_v54 = vpop.f32.mrb[5].mxu0  ;;  %v2032_v59 = vadd.f32 %v1590_v53, %v1452_v52 }
 0x1cd   :  { %v2028_v55 = vadd.f32 %v1452_v52, %v482_v54  ;;  %v1591_v56 = vpop.f32.mrb[6].mxu0 }
 0x1ce   :  { %v2030_v57 = vadd.f32 %v1591_v56, %v1452_v52  ;;  %v485_v58 = vpop.f32.mrb[7].mxu0  ;;  %v499_v0 = vmax.f32 %v2032_v59, 0.0  ;;  %v2139_v56 = vld [vmem:[%s2436_s3] sm:$0x1]  ;;  %v1754_v59 = vld [vmem:[#allocation2 + $0x58] sm:$0xff]  }
 0x1cf   :  { %v2034_v60 = vadd.f32 %v1452_v52, %v485_v58  ;;  %v497_v61 = vmax.f32 %v2028_v55, 0.0  ;;  %v681_v58 = vshrl.u32 %v201_v22, 7  ;;  %vm678_vm11 = vcmp.ge.f32.partialorder %v2139_v56, 1.0 }
 0x1d0   :  { %v500_v62 = vmax.f32 %v2030_v57, 0.0  ;;  %v1753_v57 = vld [vmem:[#allocation2 + $0x50] sm:$0xff]  }
 0x1d1   :  { %v498_v63 = vmax.f32 %v2034_v60, 0.0  ;;  %v1751_v60 = vld [vmem:[#allocation2 + $0x40] sm:$0xff]  }
 0x1d2   :  { %v502_v2 = vpack.c.bf16 %v500_v62, %v499_v0 }
 0x1d3   :  { %v501_v1 = vpack.c.bf16 %v498_v63, %v497_v61 }
 0x1d5   :  { %1592 = vmatprep.subr.bf16.mxu1 %v501_v1 }
 0x1d6   :  { %1593 = vmatpush3.bf16.msra.mxu1 %v501_v1  ;;  %v2142_v1 = vsub.s32 0, %v681_v58 }
 0x1d7   :  { %1594 = vmatprep.subr.bf16.mxu1 %v502_v2 }
 0x1da   :  { %1595 = vmatpush3.bf16.msra.mxu1 %v502_v2 }
 0x1dd   :  { %1597 = vmatmul.mubr.msk.bf16.vlgmr.msra.gmra.mrb[4].mxu1 %vm369_vm1, %v1996_v4 }
 0x1de   :  { %1624 = vmatprep.mubr.msk.bf16.mxu1 %vm369_vm1, %v1988_v3 }
 0x21c   :  { %v183_v5 = vpop.xlane.xlu0 %182 }
 0x21d   :  { %1785 = vrcp.f32 %v183_v5  ;;  %v1458_v5 = vld [vmem:[%s2442_s9] ss:$0 sm:$0xff] }
 0x220   :  { %v186_v6 = vpop.xlane.xlu1 %185  ;;  %v189_v7 = vpop.xlane.xlu0 %188 }
 0x221   :  { %1787 = vrcp.f32 %v186_v6 }
 0x222   :  { %1789 = vrcp.f32 %v189_v7 }
 0x224   :  { %v192_v8 = vpop.xlane.xlu1 %191 }
 0x225   :  { %1791 = vrcp.f32 %v192_v8 }
 0x227   :  { %v1786_v9 = vpop.eup %1785 }
 0x228   :  { %v2052_v10 = vmul.f32 %v1786_v9, %v1780_v38 }
 0x22a   :  { %v204_v11 = vsel %vm156_vm2, %v2052_v10, -inf }
 0x22b   :  { %v1788_v12 = vpop.eup %1787  ;;  %205 = vmax.xlane.f32.xlu0 %v204_v11 }
 0x22c   :  { %v1790_v13 = vpop.eup %1789  ;;  %v2056_v14 = vmul.f32 %v1788_v12, %v1784_v42  ;;  %v1876_v42 = vmov 0  }
 0x22d   :  { %v2059_v15 = vmul.f32 %v1790_v13, %v2015_v37  ;;  %1726 = vset.pattern.permute.xlu0 %v1876_v42  ;;  %1723 = vset.pattern.permute.xlu1 %v1876_v42  ;;  %v679_v2 = vsel %vm678_vm11, 1, %v1876_v42 }
 0x22e   :  { %v207_v16 = vsel %vm156_vm2, %v2056_v14, -inf  ;;  %v683_v8 = vrot.slane %v679_v2, %v2142_v1 }
 0x22f   :  { %v1792_v17 = vpop.eup %1791  ;;  %208 = vmax.xlane.f32.xlu1 %v207_v16  ;;  %v210_v18 = vsel %vm156_vm2, %v2059_v15, -inf }
 0x230   :  { %v2066_v19 = vmul.f32 %v1792_v17, %v2018_v40  ;;  %211 = vmax.xlane.f32.xlu0 %v210_v18  ;;  %vm684_vm12 = vcmp.eq.s32.totalorder %v683_v8, 1 }
 0x232   :  { %v213_v21 = vsel %vm156_vm2, %v2066_v19, -inf }
 0x233   :  { %214 = vmax.xlane.f32.xlu1 %v213_v21 }
 0x2b0   :  { %v1598_v23 = vpop.f32.mrb[4].mxu1 }
 0x2b1   :  { %v537_v24 = vpop.f32.mrb[5].mxu1 }
 0x2b2   :  { %v1599_v25 = vpop.f32.mrb[6].mxu1 }
 0x2b3   :  { %v553_v27 = vpack.c.bf16 %v1599_v25, %v1598_v23  ;;  %v540_v28 = vpop.f32.mrb[7].mxu1 }
 0x2b4   :  { %v552_v29 = vpack.c.bf16 %v540_v28, %v537_v24 }
 0x2b6   :  { %1616 = vmatprep.mubr.bf16.mxu0 %v552_v29 }
 0x2b7   :  { %1617 = vmatmul.mubr.bf16.vlgmr.msra.gmra.mrb[8].mxu0 %v553_v27 }
 0x2b8   :  { %v206_v31 = vpop.xlane.xlu0 %205  ;;  %1652 = vmatprep.mubr.msk.bf16.mxu0 %vm369_vm1, %v1988_v3 }
 0x2b9   :  { %vm216_vm3 = vcmp.ge.f32.partialorder %v2052_v10, %v206_v31 }
 0x2ba   :  { %v220_v32 = vsel %vm216_vm3, %v2070_v30, 4.0 }
 0x2bb   :  { %v224_v33 = vsel %vm156_vm2, %v220_v32, inf }
 0x2bc   :  { %v209_v34 = vpop.xlane.xlu1 %208  ;;  %225 = vmin.xlane.f32.xlu0 %v224_v33 }
 0x2bd   :  { %vm217_vm4 = vcmp.ge.f32.partialorder %v2056_v14, %v209_v34  ;;  %v212_v35 = vpop.xlane.xlu0 %211 }
 0x2be   :  { %vm218_vm5 = vcmp.ge.f32.partialorder %v2059_v15, %v212_v35  ;;  %v221_v36 = vsel %vm217_vm4, %v2070_v30, 4.0 }
 0x2bf   :  { %v227_v37 = vsel %vm156_vm2, %v221_v36, inf  ;;  %v222_v38 = vsel %vm218_vm5, %v2070_v30, 4.0 }
 0x2c0   :  { %228 = vmin.xlane.f32.xlu1 %v227_v37  ;;  %v215_v3 = vpop.xlane.xlu1 %214  ;;  %v230_v39 = vsel %vm156_vm2, %v222_v38, inf }
 0x2c1   :  { %vm219_vm6 = vcmp.ge.f32.partialorder %v2066_v19, %v215_v3  ;;  %231 = vmin.xlane.f32.xlu0 %v230_v39  ;;  %v1757_v39 = vld [vmem:[#allocation2 + $0x70] sm:$0xff]  }
 0x2c2   :  { %v223_v40 = vsel %vm219_vm6, %v2070_v30, 4.0 }
 0x2c3   :  { %v233_v41 = vsel %vm156_vm2, %v223_v40, inf  ;;  %v1758_v40 = vld [vmem:[#allocation2 + $0x78] sm:$0xff]  }
 0x2c4   :  { %234 = vmin.xlane.f32.xlu1 %v233_v41  ;;  %v1877_v41 = vmov 0.0  }
 0x349   :  { %v2088_v43 = vpop.xlane.xlu0 %225 }
 0x34a   :  { %vm236_vm7 = vcmp.eq.f32.partialorder %v2070_v30, %v2088_v43 }
 0x34b   :  { %v2096_v44 = vsel %vm236_vm7, -1e+30, %v2052_v10 }
 0x34c   :  { %v252_v45 = vsel %vm156_vm2, %v2096_v44, -inf }
 0x34d   :  { %v2100_v46 = vpop.xlane.xlu1 %228  ;;  %253 = vmax.xlane.f32.xlu0 %v252_v45  ;;  %v240_v45 = vsel %vm236_vm7, 1.0, %v1877_v41  ;;  %vm868_vm7 = vcmp.ge.f32.partialorder %v2139_v56, 2.0 }
 0x34e   :  { %vm237_vm8 = vcmp.eq.f32.partialorder %v2070_v30, %v2100_v46  ;;  %v2104_v47 = vpop.xlane.xlu0 %231 }
 0x34f   :  { %vm238_vm9 = vcmp.eq.f32.partialorder %v2070_v30, %v2104_v47  ;;  %v2112_v48 = vsel %vm237_vm8, -1e+30, %v2056_v14  ;;  %v241_v58 = vsel %vm237_vm8, 1.0, %v1877_v41 }
 0x350   :  { %v255_v49 = vsel %vm156_vm2, %v2112_v48, -inf  ;;  %v2120_v50 = vsel %vm238_vm9, -1e+30, %v2059_v15 }
 0x351   :  { %256 = vmax.xlane.f32.xlu1 %v255_v49  ;;  %v2122_v51 = vpop.xlane.xlu1 %234  ;;  %v258_v52 = vsel %vm156_vm2, %v2120_v50, -inf }
 0x352   :  { %vm239_vm10 = vcmp.eq.f32.partialorder %v2070_v30, %v2122_v51  ;;  %259 = vmax.xlane.f32.xlu0 %v258_v52 }
 0x353   :  { %v2132_v53 = vsel %vm239_vm10, -1e+30, %v2066_v19 }
 0x354   :  { %v261_v54 = vsel %vm156_vm2, %v2132_v53, -inf }
 0x355   :  { %262 = vmax.xlane.f32.xlu1 %v261_v54 }
 0x38a   :  { %v1618_v6 = vpop.f32.mrb[8].mxu0 }
 0x38b   :  { %v659_v7 = vpop.f32.mrb[9].mxu0  ;;  %v668_v9 = vadd.f32 %v1618_v6, %v1458_v5 }
 0x38c   :  { %v660_v11 = vadd.f32 %v1458_v5, %v659_v7  ;;  %v1619_v12 = vpop.f32.mrb[10].mxu0 }
 0x38d   :  { %v671_v13 = vadd.f32 %v1619_v12, %v1458_v5  ;;  %v662_v16 = vpop.f32.mrb[11].mxu0  ;;  %v676_v21 = vmax.f32 %v668_v9, 0.0 }
 0x38e   :  { %v674_v17 = vmax.f32 %v660_v11, 0.0  ;;  %v663_v18 = vadd.f32 %v1458_v5, %v662_v16  ;;  %v242_v5 = vsel %vm238_vm9, 1.0, %v1877_v41  ;;  %vm1100_vm9 = vcmp.eq.f32.partialorder %v2139_v56, 1.0 }
 0x38f   :  { %v677_v20 = vmax.f32 %v671_v13, 0.0  ;;  %v2165_v27 = vsel %vm684_vm12, %v676_v21, %v499_v0 }
 0x390   :  { %v675_v22 = vmax.f32 %v663_v18, 0.0  ;;  %v2151_v23 = vsel %vm684_vm12, %v674_v17, %v497_v61  ;;  %v1752_v61 = vld [vmem:[#allocation2 + $0x48] sm:$0xff]  }
 0x391   :  { %v2159_v25 = vsel %vm684_vm12, %v677_v20, %v500_v62  ;;  %v1755_v62 = vld [vmem:[#allocation2 + $0x60] sm:$0xff]   ;;  %v243_v20 = vsel %vm239_vm10, 1.0, %v1877_v41  ;;  %vm1127_vm10 = vcmp.eq.f32.partialorder %v2139_v56, 2.0 }
 0x392   :  { %v2155_v24 = vsel %vm684_vm12, %v675_v22, %v498_v63  ;;  %v690_v55 = vpack.c.bf16 %v2159_v25, %v2165_v27  ;;  %v1756_v63 = vld [vmem:[#allocation2 + $0x68] sm:$0xff]  }
 0x393   :  { %v689_v26 = vpack.c.bf16 %v2155_v24, %v2151_v23 }
 0x395   :  { %1620 = vmatprep.subr.bf16.mxu1 %v689_v26 }
 0x396   :  { %1621 = vmatpush3.bf16.msra.mxu1 %v689_v26 }
 0x397   :  { %1622 = vmatprep.subr.bf16.mxu1 %v690_v55 }
 0x39a   :  { %1623 = vmatpush3.bf16.msra.mxu1 %v690_v55 }
 0x39b   :  { %1628 = vmatprep.subr.bf16.mxu1 %v1751_v60 }
 0x39d   :  { %1625 = vmatmul.mubr.msk.bf16.vlgmr.msra.gmra.mrb[8].mxu1 %vm369_vm1, %v1996_v4 }
 0x39e   :  { %1629 = vmatpush3.bf16.msra.mxu1 %v1751_v60 }
 0x39f   :  { %1630 = vmatprep.subr.bf16.mxu1 %v1752_v61 }
 0x3a2   :  { %1631 = vmatpush3.bf16.msra.mxu1 %v1752_v61 }
 0x3a3   :  { %1632 = vmatprep.subr.bf16.mxu1 %v1753_v57 }
 0x3a6   :  { %1633 = vmatpush3.bf16.msra.mxu1 %v1753_v57 }
 0x3a7   :  { %1634 = vmatprep.subr.bf16.mxu1 %v1754_v59 }
 0x3aa   :  { %1635 = vmatpush3.bf16.msra.mxu1 %v1754_v59 }
 0x3ab   :  { %1636 = vmatprep.subr.bf16.mxu1 %v1755_v62 }
 0x3ae   :  { %1637 = vmatpush3.bf16.msra.mxu1 %v1755_v62 }
 0x3af   :  { %1638 = vmatprep.subr.bf16.mxu1 %v1756_v63 }
 0x3b2   :  { %1639 = vmatpush3.bf16.msra.mxu1 %v1756_v63 }
 0x3b3   :  { %1640 = vmatprep.subr.bf16.mxu1 %v1757_v39 }
 0x3b6   :  { %1641 = vmatpush3.bf16.msra.mxu1 %v1757_v39 }
 0x3b7   :  { %1642 = vmatprep.subr.bf16.mxu1 %v1758_v40 }
 0x3ba   :  { %1643 = vmatpush3.bf16.msra.mxu1 %v1758_v40  ;;  %v1878_v40 = vmov 1  }
 0x3bb   :  { %1676 = vmatprep.subr.bf16.mxu1 %v1877_v41 }
 0x3da   :  { %v254_v0 = vpop.xlane.xlu0 %253 }
 0x3db   :  { %vm264_vm13 = vcmp.ge.f32.partialorder %v2096_v44, %v254_v0 }
 0x3dc   :  { %v268_v28 = vsel %vm264_vm13, %v2070_v30, 4.0 }
 0x3dd   :  { %v272_v29 = vsel %vm156_vm2, %v268_v28, inf }
 0x3de   :  { %v257_v31 = vpop.xlane.xlu1 %256  ;;  %273 = vmin.xlane.f32.xlu0 %v272_v29 }
 0x3df   :  { %vm265_vm14 = vcmp.ge.f32.partialorder %v2112_v48, %v257_v31  ;;  %v260_v32 = vpop.xlane.xlu0 %259 }
 0x3e0   :  { %vm266_vm15 = vcmp.ge.f32.partialorder %v2120_v50, %v260_v32  ;;  %v269_v33 = vsel %vm265_vm14, %v2070_v30, 4.0  ;;  %vm1154_vm14 = vcmp.eq.f32.partialorder %v2139_v56, 3.0 }
 0x3e1   :  { %v275_v34 = vsel %vm156_vm2, %v269_v33, inf  ;;  %v270_v35 = vsel %vm266_vm15, %v2070_v30, 4.0 }
 0x3e2   :  { %276 = vmin.xlane.f32.xlu1 %v275_v34  ;;  %v263_v36 = vpop.xlane.xlu1 %262  ;;  %v278_v37 = vsel %vm156_vm2, %v270_v35, inf }
 0x3e3   :  { %vm267_vm0 = vcmp.ge.f32.partialorder %v2132_v53, %v263_v36  ;;  %279 = vmin.xlane.f32.xlu0 %v278_v37 }
 0x3e4   :  { %v271_v38 = vsel %vm267_vm0, %v2070_v30, 4.0  ;;  %vm355_vm0 = vcmask 0  }
 0x3e5   :  { %v281_v3 = vsel %vm156_vm2, %v271_v38, inf }
 0x3e6   :  { %282 = vmin.xlane.f32.xlu1 %v281_v3 }
 0x46b   :  { %v274_v44 = vpop.xlane.xlu0 %273 }
 0x46c   :  { %vm284_vm3 = vcmp.eq.f32.partialorder %v2070_v30, %v274_v44  ;;  %v1879_v44 = vmov 2  }
 0x46d   :  { %v288_v48 = vsel %vm284_vm3, 1.0, %v1877_v41  ;;  %vm1881_vm3 = vmmov 0  }
 0x46e   :  { %v292_v49 = vadd.f32 %v288_v48, %v240_v45  ;;  %v1880_v45 = vmov 3  }
 0x46f   :  { %v277_v50 = vpop.xlane.xlu1 %276 }
 0x470   :  { %v1626_v52 = vpop.f32.mrb[8].mxu1  ;;  %vm285_vm4 = vcmp.eq.f32.partialorder %v2070_v30, %v277_v50  ;;  %v280_v53 = vpop.xlane.xlu0 %279  ;;  %v296_v54 = vmul.f32 %v292_v49, %v2052_v10  ;;  %v337_v11 = vsel %vm156_vm2, %v292_v49, 0.0 }
 0x471   :  { %v289_v2 = vsel %vm285_vm4, 1.0, %v1877_v41  ;;  %vm286_vm5 = vcmp.eq.f32.partialorder %v2070_v30, %v280_v53  ;;  %v725_v43 = vpop.f32.mrb[9].mxu1  ;;  %v324_v53 = vsel %vm156_vm2, %v2052_v10, 0.0  ;;  %vm1058_vm4 = vcmp.ge.f32.partialorder %v2139_v56, 3.0 }
 0x472   :  { %v293_v6 = vadd.f32 %v289_v2, %v241_v58  ;;  %v290_v7 = vsel %vm286_vm5, 1.0, %v1877_v41  ;;  %v1627_v8 = vpop.f32.mrb[10].mxu1  ;;  %v300_v9 = vsel %vm156_vm2, %v296_v54, 0.0  ;;  %v1470_v2 = vld [vmem:[%s2442_s9 + $0x1] ss:$0 sm:$0xff] }
 0x473   :  { %v294_v46 = vadd.f32 %v290_v7, %v242_v5  ;;  %v741_v12 = vpack.c.bf16 %v1627_v8, %v1626_v52  ;;  %v728_v13 = vpop.f32.mrb[11].mxu1  ;;  %v283_v16 = vpop.xlane.xlu1 %282  ;;  %301 = vadd.xlane.f32.xlu0 %v300_v9  ;;  %v325_v52 = vsel %vm156_vm2, %v2056_v14, 0.0 }
 0x474   :  { %v338_v17 = vsel %vm156_vm2, %v293_v6, 0.0  ;;  %v740_v18 = vpack.c.bf16 %v728_v13, %v725_v43  ;;  %vm287_vm6 = vcmp.eq.f32.partialorder %v2070_v30, %v283_v16  ;;  %v297_v47 = vmul.f32 %v293_v6, %v2056_v14 }
 0x475   :  { %v339_v21 = vadd.f32 %v338_v17, %v337_v11  ;;  %v291_v22 = vsel %vm287_vm6, 1.0, %v1877_v41  ;;  %v298_v26 = vmul.f32 %v294_v46, %v2059_v15  ;;  %v340_v55 = vsel %vm156_vm2, %v294_v46, 0.0 }
 0x476   :  { %v295_v60 = vadd.f32 %v291_v22, %v243_v20  ;;  %1644 = vmatprep.mubr.bf16.mxu1 %v740_v18  ;;  %v303_v61 = vsel %vm156_vm2, %v297_v47, 0.0  ;;  %v326_v58 = vadd.f32 %v325_v52, %v324_v53  ;;  %v327_v14 = vsel %vm156_vm2, %v2059_v15, 0.0 }
 0x477   :  { %v341_v57 = vadd.f32 %v340_v55, %v339_v21  ;;  %1645 = vmatmul.mubr.bf16.vlgmr.msra.gmra.mrb[12].mxu1 %v741_v12  ;;  %304 = vadd.xlane.f32.xlu1 %v303_v61  ;;  %v306_v59 = vsel %vm156_vm2, %v298_v26, 0.0  ;;  %v329_v12 = vsel %vm156_vm2, %v2066_v19, 0.0 }
 0x478   :  { %v342_v62 = vsel %vm156_vm2, %v295_v60, 0.0  ;;  %307 = vadd.xlane.f32.xlu0 %v306_v59  ;;  %v299_v30 = vmul.f32 %v295_v60, %v2066_v19  ;;  %v328_v11 = vadd.f32 %v327_v14, %v326_v58  ;;  %1680 = vmatprep.mubr.msk.bf16.mxu1 %vm1881_vm3, %v1877_v41 }
 0x479   :  { %v2219_v51 = vadd.f32 %v342_v62, %v341_v57 }
 0x47a   :  { %v309_v63 = vsel %vm156_vm2, %v299_v30, 0.0  ;;  %v330_v20 = vadd.f32 %v329_v12, %v328_v11  ;;  %v1766_v12 = vld [vmem:[#allocation2 + $0xb8] sm:$0xff]   ;;  %v1773_v11 = vld [vmem:[%s2443_s10 + $0x30] sm:$0xff]  }
 0x47b   :  { %310 = vadd.xlane.f32.xlu1 %v309_v63  ;;  %v344_v21 = vrot.slane %v2219_v51, 4 }
 0x47c   :  { %v331_v60 = vrot.slane %v330_v20, 4 }
 0x500   :  { %v302_v0 = vpop.xlane.xlu0 %301 }
 0x501   :  { %v312_v28 = vmax.f32 %v302_v0, 1e-12 }
 0x503   :  { %1793 = vrcp.f32 %v312_v28 }
 0x504   :  { %v305_v29 = vpop.xlane.xlu1 %304 }
 0x505   :  { %v308_v31 = vpop.xlane.xlu0 %307  ;;  %v313_v48 = vmax.f32 %v305_v29, 1e-12 }
 0x506   :  { %v314_v32 = vmax.f32 %v308_v31, 1e-12  ;;  %v1760_v31 = vld [vmem:[#allocation2 + $0x88] sm:$0xff]  }
 0x508   :  { %1795 = vrcp.f32 %v314_v32  ;;  %v311_v33 = vpop.xlane.xlu1 %310  ;;  %v1761_v32 = vld [vmem:[#allocation2 + $0x90] sm:$0xff]  }
 0x509   :  { %v315_v34 = vmax.f32 %v311_v33, 1e-12  ;;  %v1762_v33 = vld [vmem:[#allocation2 + $0x98] sm:$0xff]  }
 0x50b   :  { %1797 = vrcp.f32 %v315_v34  ;;  %v1764_v34 = vld [vmem:[#allocation2 + $0xa8] sm:$0xff]  }
 0x50c   :  { %1799 = vrcp.f32 %v313_v48 }
 0x50d   :  { %v1794_v35 = vpop.eup %1793 }
 0x50e   :  { %v317_v36 = vmul.f32 %v1794_v35, %v296_v54  ;;  %v869_v54 = vsel %vm868_vm7, 1, %v1876_v42  ;;  %v1101_v35 = vsel %vm1100_vm9, 1, %v1876_v42 }
 0x50f   :  { %v873_v6 = vrot.slane %v869_v54, %v2142_v1 }
 0x510   :  { %1078 = vperm.xlu0 %1726, %v317_v36  }
 0x511   :  { %vm874_vm8 = vcmp.eq.s32.totalorder %v873_v6, 1 }
 0x512   :  { %v1796_v37 = vpop.eup %1795 }
 0x513   :  { %v321_v38 = vmul.f32 %v1796_v37, %v298_v26  ;;  %v1765_v37 = vld [vmem:[#allocation2 + $0xb0] sm:$0xff]  }
 0x515   :  { %v1798_v3 = vpop.eup %1797  ;;  %1088 = vperm.xlu1 %1723, %v321_v38  }
 0x516   :  { %v323_v39 = vmul.f32 %v1798_v3, %v299_v30  ;;  %v1800_v49 = vpop.eup %1799 }
 0x517   :  { %v319_v50 = vmul.f32 %v1800_v49, %v297_v47 }
 0x518   :  { %1093 = vperm.xlu0 %1726, %v323_v39  }
 0x519   :  { %1724 = vset.pattern.permute.xlu1 %v1878_v40 }
 0x51a   :  { %1116 = vperm.xlu1 %1724, %v321_v38  }
 0x51c   :  { %1730 = vset.pattern.permute.xlu0 %v1878_v40 }
 0x51d   :  { %1120 = vperm.xlu0 %1730, %v323_v39  }
 0x51e   :  { %1725 = vset.pattern.permute.xlu1 %v1879_v44 }
 0x51f   :  { %1143 = vperm.xlu1 %1725, %v321_v38  }
 0x521   :  { %1736 = vset.pattern.permute.xlu0 %v1880_v45 }
 0x522   :  { %1170 = vperm.xlu0 %1736, %v321_v38   ;;  %v1105_v38 = vrot.slane %v1101_v35, %v2142_v1 }
 0x523   :  { %1727 = vset.pattern.permute.xlu1 %v1878_v40 }
 0x524   :  { %1108 = vperm.xlu1 %1727, %v317_v36   ;;  %vm2266_vm11 = vcmp.eq.s32.totalorder %v1105_v38, 1 }
 0x528   :  { %1728 = vset.pattern.permute.xlu1 %v1879_v44 }
 0x529   :  { %1135 = vperm.xlu1 %1728, %v317_v36  }
 0x52d   :  { %1729 = vset.pattern.permute.xlu1 %v1880_v45 }
 0x52e   :  { %1162 = vperm.xlu1 %1729, %v317_v36  }
 0x532   :  { %1731 = vset.pattern.permute.xlu1 %v1879_v44 }
 0x533   :  { %1147 = vperm.xlu1 %1731, %v323_v39  }
 0x537   :  { %1732 = vset.pattern.permute.xlu1 %v1876_v42 }
 0x538   :  { %1083 = vperm.xlu1 %1732, %v319_v50  }
 0x53c   :  { %1733 = vset.pattern.permute.xlu1 %v1878_v40  ;;  %v1128_v40 = vsel %vm1127_vm10, 1, %v1876_v42 }
 0x53d   :  { %1112 = vperm.xlu1 %1733, %v319_v50   ;;  %v1132_v48 = vrot.slane %v1128_v40, %v2142_v1 }
 0x53f   :  { %vm2281_vm13 = vcmp.eq.s32.totalorder %v1132_v48, 1 }
 0x541   :  { %1734 = vset.pattern.permute.xlu1 %v1879_v44 }
 0x542   :  { %1139 = vperm.xlu1 %1734, %v319_v50  }
 0x546   :  { %1735 = vset.pattern.permute.xlu1 %v1880_v45 }
 0x547   :  { %1166 = vperm.xlu1 %1735, %v319_v50  }
 0x54a   :  { %v1646_v43 = vpop.f32.mrb[12].mxu1 }
 0x54b   :  { %v849_v5 = vpop.f32.mrb[13].mxu1  ;;  %1174 = vperm.xlu1 %1735, %v323_v39   ;;  %v858_v7 = vadd.f32 %v1646_v43, %v1470_v2 }
 0x54c   :  { %v850_v8 = vadd.f32 %v1470_v2, %v849_v5  ;;  %v1647_v9 = vpop.f32.mrb[14].mxu1  ;;  %v1155_v5 = vsel %vm1154_vm14, 1, %v1876_v42 }
 0x54d   :  { %v861_v10 = vadd.f32 %v1647_v9, %v1470_v2  ;;  %v852_v46 = vpop.f32.mrb[15].mxu1  ;;  %v866_v18 = vmax.f32 %v858_v7, 0.0 }
 0x54e   :  { %v864_v13 = vmax.f32 %v850_v8, 0.0  ;;  %v853_v16 = vadd.f32 %v1470_v2, %v852_v46  ;;  %v1159_v8 = vrot.slane %v1155_v5, %v2142_v1 }
 0x54f   :  { %v867_v17 = vmax.f32 %v861_v10, 0.0  ;;  %v2250_v55 = vsel %vm874_vm8, %v866_v18, %v2165_v27 }
 0x550   :  { %v865_v47 = vmax.f32 %v853_v16, 0.0  ;;  %v2239_v15 = vsel %vm874_vm8, %v864_v13, %v2151_v23  ;;  %v345_v23 = vadd.f32 %v344_v21, %v2219_v51  ;;  %v1759_v51 = vld [vmem:[#allocation2 + $0x80] sm:$0xff]   ;;  %vm2300_vm15 = vcmp.eq.s32.totalorder %v1159_v8, 1 }
 0x551   :  { %v2245_v26 = vsel %vm874_vm8, %v867_v17, %v2159_v25  ;;  %v1771_v8 = vld [vmem:[%s2443_s10 + $0x20] sm:$0xff]  }
 0x552   :  { %v2242_v22 = vsel %vm874_vm8, %v865_v47, %v2155_v24  ;;  %v880_v61 = vpack.c.bf16 %v2245_v26, %v2250_v55  ;;  %v332_v24 = vadd.f32 %v331_v60, %v330_v20  ;;  %v346_v57 = vrot.slane %v345_v23, 2 }
 0x553   :  { %v879_v19 = vpack.c.bf16 %v2242_v22, %v2239_v15 }
 0x554   :  { %v333_v25 = vrot.slane %v332_v24, 2  ;;  %v347_v59 = vadd.f32 %v346_v57, %v345_v23 }
 0x555   :  { %1648 = vmatprep.subr.bf16.mxu0 %v879_v19 }
 0x556   :  { %1649 = vmatpush3.bf16.msra.mxu0 %v879_v19  ;;  %v334_v62 = vadd.f32 %v333_v25, %v332_v24  ;;  %v348_v27 = vrot.slane %v347_v59, 1 }
 0x557   :  { %1650 = vmatprep.subr.bf16.mxu0 %v880_v61 }
 0x558   :  { %v335_v30 = vrot.slane %v334_v62, 1  ;;  %v349_v63 = vadd.f32 %v348_v27, %v347_v59 }
 0x55a   :  { %1651 = vmatpush3.bf16.msra.mxu0 %v880_v61  ;;  %v336_v0 = vadd.f32 %v335_v30, %v334_v62 }
 0x55b   :  { %1656 = vmatprep.subr.bf16.mxu0 %v1759_v51 }
 0x55c   :  { %v350_v28 = vmul.f32 %v349_v63, %v336_v0 }
 0x55d   :  { %1653 = vmatmul.mubr.msk.bf16.vlgmr.msra.gmra.mrb[12].mxu0 %vm369_vm1, %v1996_v4  ;;  %v1763_v4 = vld [vmem:[#allocation2 + $0xa0] sm:$0xff]  }
 0x55e   :  { %v351_v29 = vsel %vm156_vm2, %v350_v28, 0.0  ;;  %1657 = vmatpush3.bf16.msra.mxu0 %v1759_v51  ;;  %vm1069_vm2 = vcmp.eq.f32.partialorder %v2139_v56, 0.0 }
 0x55f   :  { %1658 = vmatprep.subr.bf16.mxu0 %v1760_v31  ;;  %v1070_v36 = vsel %vm1069_vm2, 1, %v1876_v42 }
 0x560   :  { %v1074_v3 = vrot.slane %v1070_v36, %v2142_v1 }
 0x562   :  { %1659 = vmatpush3.bf16.msra.mxu0 %v1760_v31  ;;  %vm2270_vm12 = vcmp.eq.s32.totalorder %v1074_v3, 1 }
 0x563   :  { %1660 = vmatprep.subr.bf16.mxu0 %v1761_v32 }
 0x566   :  { %1661 = vmatpush3.bf16.msra.mxu0 %v1761_v32  ;;  %v1059_v32 = vsel %vm1058_vm4, 1, %v1876_v42 }
 0x567   :  { %1662 = vmatprep.subr.bf16.mxu0 %v1762_v33 }
 0x56a   :  { %1663 = vmatpush3.bf16.msra.mxu0 %v1762_v33  ;;  %v1482_v33 = vld [vmem:[%s2442_s9 + $0x2] ss:$0 sm:$0xff]  ;;  %s1823_s9 = scalar_lea.vmem %s1430_s17, 16 }
 0x56b   :  { %1664 = vmatprep.subr.bf16.mxu0 %v1763_v4  ;;  %p1824_p8 = scmp.ne.s32.totalorder %s1430_s17, %s1823_s9 }
 0x56e   :  { %1665 = vmatpush3.bf16.msra.mxu0 %v1763_v4  ;;  %v1063_v4 = vrot.slane %v1059_v32, %v2142_v1 }
 0x56f   :  { %352 = vadd.xlane.f32.xlu1 %v351_v29  ;;  %1666 = vmatprep.subr.bf16.mxu0 %v1764_v34 }
 0x570   :  { %vm2333_vm5 = vcmp.eq.s32.totalorder %v1063_v4, 1 }
 0x572   :  { %1667 = vmatpush3.bf16.msra.mxu0 %v1764_v34 }
 0x573   :  { %1668 = vmatprep.subr.bf16.mxu0 %v1765_v37 }
 0x576   :  { %1669 = vmatpush3.bf16.msra.mxu0 %v1765_v37 }
 0x577   :  { %1670 = vmatprep.subr.bf16.mxu0 %v1766_v12 }
 0x57a   :  { %1671 = vmatpush3.bf16.msra.mxu0 %v1766_v12 }
 0x57b   :  { %1704 = vmatprep.subr.bf16.mxu0 %v1877_v41 }
 0x58f   :  { %v1079_v43 = vpop.permute.xlu0 %1078 }
 0x590   :  { %v1096_v6 = vsel %vm2270_vm12, %v1079_v43, 0.0 }
 0x594   :  { %v1089_v39 = vpop.permute.xlu1 %1088 }
 0x595   :  { %v1098_v49 = vsel %vm2270_vm12, %v1089_v39, 0.0 }
 0x597   :  { %v1094_v20 = vpop.permute.xlu0 %1093 }
 0x598   :  { %v1099_v24 = vsel %vm2270_vm12, %v1094_v20, 0.0  ;;  %v1492_v20 = vld [vmem:[%s2444_s11] ss:$0 sm:$0xff] }
 0x599   :  { %v1117_v50 = vpop.permute.xlu1 %1116 }
 0x59a   :  { %v2279_v52 = vsel %vm2266_vm11, %v1117_v50, %v1098_v49 }
 0x59c   :  { %v1121_v60 = vpop.permute.xlu0 %1120 }
 0x59d   :  { %v1126_v57 = vsel %vm2266_vm11, %v1121_v60, %v1099_v24 }
 0x59e   :  { %v2285_v54 = vpop.permute.xlu1 %1143 }
 0x59f   :  { %v1152_v58 = vsel %vm2281_vm13, %v2285_v54, %v2279_v52 }
 0x5a1   :  { %v1171_v37 = vpop.permute.xlu0 %1170 }
 0x5a2   :  { %v1179_v1 = vsel %vm2300_vm15, %v1171_v37, %v1152_v58 }
 0x5a3   :  { %v1109_v2 = vpop.permute.xlu1 %1108 }
 0x5a4   :  { %v1123_v14 = vsel %vm2266_vm11, %v1109_v2, %v1096_v6 }
 0x5a8   :  { %v1136_v7 = vpop.permute.xlu1 %1135 }
 0x5a9   :  { %v1150_v9 = vsel %vm2281_vm13, %v1136_v7, %v1123_v14  ;;  %v1769_v14 = vld [vmem:[%s2443_s10 + $0x10] sm:$0xff]   ;;  %v1770_v7 = vld [vmem:[%s2443_s10 + $0x18] sm:$0xff]  }
 0x5ad   :  { %v1163_v10 = vpop.permute.xlu1 %1162 }
 0x5ae   :  { %v1177_v46 = vsel %vm2300_vm15, %v1163_v10, %v1150_v9  ;;  %v1772_v9 = vld [vmem:[%s2443_s10 + $0x28] sm:$0xff]   ;;  %v1774_v10 = vld [vmem:[%s2443_s10 + $0x38] sm:$0xff]  }
 0x5b2   :  { %v1148_v13 = vpop.permute.xlu1 %1147 }
 0x5b3   :  { %v1153_v25 = vsel %vm2281_vm13, %v1148_v13, %v1126_v57 }
 0x5b7   :  { %v1084_v16 = vpop.permute.xlu1 %1083 }
 0x5b8   :  { %v1097_v17 = vsel %vm2270_vm12, %v1084_v16, 0.0 }
 0x5bc   :  { %v1113_v18 = vpop.permute.xlu1 %1112 }
 0x5bd   :  { %v1124_v47 = vsel %vm2266_vm11, %v1113_v18, %v1097_v17  ;;  %v1775_v18 = vld [vmem:[%s2445_s12] sm:$0xff]  }
 0x5c1   :  { %v1140_v21 = vpop.permute.xlu1 %1139 }
 0x5c2   :  { %v1151_v19 = vsel %vm2281_vm13, %v1140_v21, %v1124_v47  ;;  %v1776_v47 = vld [vmem:[%s2445_s12 + $0x8] sm:$0xff]   ;;  %s1827_s12 = scalar_lea.vmem %s1430_s17, 32 }
 0x5c3   :  { %p1829_p10 = scmp.lt.s32.totalorder %s1827_s12, %s1823_s9 }
 0x5c5   :  { %p1830_p11 = por %p1829_p10, %p1828_p9 }
 0x5c6   :  { %v1167_v61 = vpop.permute.xlu1 %1166 }
 0x5c7   :  { %v1178_v23 = vsel %vm2300_vm15, %v1167_v61, %v1151_v19  ;;  %p1831_p12 = pnand %p1830_p11, %p1824_p8 }
 0x5ca   :  { %v1175_v59 = vpop.permute.xlu1 %1174 }
 0x5cb   :  { %v1180_v62 = vsel %vm2300_vm15, %v1175_v59, %v1153_v25 }
 0x5fc   :  { %v353_v27 = vpop.xlane.xlu1 %352 }
 0x5fd   :  { %v354_v30 = vmul.f32 3.90625e-05, %v353_v27 }
 0x5ff   :  { %356 = vst.msk [vmem:[#allocation6] sm:$0x1] %vm355_vm0, %v354_v30 }
 0x630   :  { %v1654_v63 = vpop.f32.mrb[12].mxu0 }
 0x631   :  { %v915_v0 = vpop.f32.mrb[13].mxu0 }
 0x632   :  { %v1655_v28 = vpop.f32.mrb[14].mxu0 }
 0x633   :  { %v931_v29 = vpack.c.bf16 %v1655_v28, %v1654_v63  ;;  %v918_v51 = vpop.f32.mrb[15].mxu0 }
 0x634   :  { %v930_v31 = vpack.c.bf16 %v918_v51, %v915_v0 }
 0x636   :  { %1672 = vmatprep.mubr.bf16.mxu0 %v930_v31 }
 0x637   :  { %1673 = vmatmul.mubr.bf16.vlgmr.msra.gmra.mrb[16].mxu0 %v931_v29 }
 0x638   :  { %1708 = vmatprep.mubr.msk.bf16.mxu0 %vm1881_vm3, %v1877_v41  ;;  %1705 = vmatpush3.bf16.msra.mxu0 %v1775_v18 }
 0x639   :  { %1706 = vmatprep.subr.bf16.mxu0 %v1877_v41 }
 0x63c   :  { %1707 = vmatpush3.bf16.msra.mxu0 %v1776_v47 }
 0x70a   :  { %v1674_v34 = vpop.f32.mrb[16].mxu0 }
 0x70b   :  { %v1048_v35 = vadd.f32 %v1674_v34, %v1482_v33  ;;  %v1039_v36 = vpop.f32.mrb[17].mxu0 }
 0x70c   :  { %v1040_v3 = vadd.f32 %v1482_v33, %v1039_v36  ;;  %v1675_v39 = vpop.f32.mrb[18].mxu0 }
 0x70d   :  { %v1056_v40 = vmax.f32 %v1048_v35, 0.0  ;;  %v1051_v56 = vadd.f32 %v1675_v39, %v1482_v33  ;;  %v1042_v44 = vpop.f32.mrb[19].mxu0 }
 0x70e   :  { %v1054_v42 = vmax.f32 %v1040_v3, 0.0  ;;  %v1043_v45 = vadd.f32 %v1482_v33, %v1042_v44 }
 0x70f   :  { %v1067_v48 = vsel %vm2333_vm5, %v1056_v40, %v2250_v55  ;;  %v1057_v49 = vmax.f32 %v1051_v56, 0.0 }
 0x710   :  { %v1183_v50 = vmul.f32 %v1179_v1, %v1067_v48  ;;  %v1065_v2 = vsel %vm2333_vm5, %v1054_v42, %v2239_v15  ;;  %v1055_v43 = vmax.f32 %v1043_v45, 0.0  ;;  %v1185_v15 = vld [vmem:[%s2435_s2] sm:$0x1] }
 0x711   :  { %v1181_v5 = vmul.f32 %v1177_v46, %v1065_v2  ;;  %v1068_v53 = vsel %vm2333_vm5, %v1057_v49, %v2245_v26  ;;  %v1767_v26 = vld [vmem:[%s2443_s10] sm:$0xff]  }
 0x712   :  { %v1184_v52 = vmul.f32 %v1180_v62, %v1068_v53  ;;  %v1066_v54 = vsel %vm2333_vm5, %v1055_v43, %v2242_v22  ;;  %v1768_v22 = vld [vmem:[%s2443_s10 + $0x8] sm:$0xff]  }
 0x713   :  { %v1182_v58 = vmul.f32 %v1178_v23, %v1066_v54 }
 0x714   :  { %v1187_v6 = vpack.c.bf16 %v1184_v52, %v1183_v50 }
 0x715   :  { %v1186_v55 = vpack.c.bf16 %v1182_v58, %v1181_v5 }
 0x717   :  { %1677 = vmatpush3.bf16.msra.mxu1 %v1186_v55 }
 0x718   :  { %1678 = vmatprep.subr.bf16.mxu1 %v1877_v41 }
 0x71b   :  { %1679 = vmatpush3.bf16.msra.mxu1 %v1187_v6 }
 0x71c   :  { %1684 = vmatprep.subr.bf16.mxu1 %v1877_v41 }
 0x71e   :  { %1681 = vmatmul.mubr.msk.bf16.vlgmr.msra.gmra.mrb[16].mxu1 %vm369_vm1, %v1185_v15 }
 0x71f   :  { %1685 = vmatpush3.bf16.msra.mxu1 %v1767_v26  ;;  %1700 = vmatprep.mubr.msk.bf16.mxu1 %vm1881_vm3, %v1877_v41 }
 0x720   :  { %1686 = vmatprep.subr.bf16.mxu1 %v1877_v41 }
 0x723   :  { %1687 = vmatpush3.bf16.msra.mxu1 %v1768_v22 }
 0x724   :  { %1688 = vmatprep.subr.bf16.mxu1 %v1877_v41 }
 0x727   :  { %1689 = vmatpush3.bf16.msra.mxu1 %v1769_v14 }
 0x728   :  { %1690 = vmatprep.subr.bf16.mxu1 %v1877_v41 }
 0x72b   :  { %1691 = vmatpush3.bf16.msra.mxu1 %v1770_v7 }
 0x72c   :  { %1692 = vmatprep.subr.bf16.mxu1 %v1877_v41 }
 0x72f   :  { %1693 = vmatpush3.bf16.msra.mxu1 %v1771_v8 }
 0x730   :  { %1694 = vmatprep.subr.bf16.mxu1 %v1877_v41 }
 0x733   :  { %1695 = vmatpush3.bf16.msra.mxu1 %v1772_v9 }
 0x734   :  { %1696 = vmatprep.subr.bf16.mxu1 %v1877_v41 }
 0x737   :  { %1697 = vmatpush3.bf16.msra.mxu1 %v1773_v11 }
 0x738   :  { %1698 = vmatprep.subr.bf16.mxu1 %v1877_v41 }
 0x73b   :  { %1699 = vmatpush3.bf16.msra.mxu1 %v1774_v10 }
 0x7f1   :  { %v1225_v46 = vpop.f32.mrb[16].mxu1 }
 0x7f2   :  { %v1231_v12 = vpack.c.bf16 %v1225_v46, %v1225_v46  ;;  %v1682_v13 = vpop.f32.mrb[17].mxu1 }
 0x7f3   :  { %v1228_v16 = vpop.f32.mrb[18].mxu1 }
 0x7f4   :  { %v1683_v17 = vpop.f32.mrb[19].mxu1  ;;  %1701 = vmatmul.mubr.bf16.vlgmr.msra.gmra.mrb[20].mxu1 %v1231_v12 }
 0x8c7   :  { %v1337_v21 = vpop.f32.mrb[20].mxu1 }
 0x8c8   :  { %v1338_v19 = vadd.f32 %v1492_v20, %v1337_v21  ;;  %v1702_v60 = vpop.f32.mrb[21].mxu1 }
 0x8c9   :  { %v1340_v61 = vpop.f32.mrb[22].mxu1 }
 0x8ca   :  { %v1343_v23 = vmax.f32 %v1338_v19, 0.0  ;;  %v1703_v24 = vpop.f32.mrb[23].mxu1 }
 0x8cc   :  { %v1344_v57 = vpack.c.bf16 %v1343_v23, %v1343_v23 }
 0x8ce   :  { %1709 = vmatmul.mubr.msk.bf16.vlgmr.msra.gmra.mrb[20].mxu0 %vm369_vm1, %v1344_v57 }
 0x8cf   :  { %1834 = shalt.err (!%p1831_p12)
}
 0x8d0   :  { %s1835_s20 = scalar_lea.hbm %s2448_s15, 16 }
 0x8d1   :  { %p1836_p13 = scmp.ne.s32.totalorder %s2448_s15, %s1835_s20  ;;  %p1839_p0 = scmp.lt.u32.totalorder %s1835_s20, %s2448_s15 }
 0x8d3   :  { %p1841_p1 = pnand %p1839_p0, %p1836_p13 }
 0x8d5   :  { %1844 = shalt.err (!%p1841_p1)
}
 0x8d6   :  { %1432 = dma.vmem_to_hbm [thread:$0]  %s1430_s17, 16, %s2448_s15, [#allocation7]   ;;  %v1501_v41 = vld [vmem:[%s2446_s13] ss:$0 sm:$0xff]  ;;  %vm1411_vm1 = vcmask 58368  }
 0x8d7   :  { %s1883_s0 = smov [#allocation5]  }
 0x8d8   :  { %s1419_s25 = sshll.u32 %s1883_s0, 4  ;;  %s1420_s25 = int_to_ptr.vmem [resolvable:$true] %s1419_s25 }
 0x8d9   :  { %s1845_s26 = scalar_lea.vmem %s1420_s25, 32  ;;  %p1850_p3 = scmp.lt.s32.totalorder %s1420_s25, %s1420_s25 }
 0x8da   :  { %p1846_p2 = scmp.ne.s32.totalorder %s1420_s25, %s1845_s26  ;;  %p1851_p4 = scmp.lt.s32.totalorder %s1845_s26, %s1845_s26 }
 0x8dc   :  { %p1852_p5 = por %p1851_p4, %p1850_p3 }
 0x8de   :  { %p1853_p6 = pnand %p1852_p5, %p1846_p2 }
 0x9a1   :  { %v1405_v25 = vpop.f32.mrb[20].mxu0 }
 0x9a2   :  { %v1406_v59 = vadd.f32 %v1501_v41, %v1405_v25  ;;  %v1710_v62 = vpop.f32.mrb[21].mxu0 }
 0x9a3   :  { %v1408_v27 = vpop.f32.mrb[22].mxu0 }
 0x9a4   :  { %v1711_v30 = vpop.f32.mrb[23].mxu0  ;;  %1412 = vst.msk [vmem:[#allocation5] sm:$0x3] %vm1411_vm1, %v1406_v59 }
 0x9a5   :  { %1856 = shalt.err (!%p1853_p6)
}
 0x9a6   :  { %s1857_s13 = scalar_lea.hbm %s2447_s14, 32 }
 0x9a7   :  { %p1858_p7 = scmp.ne.s32.totalorder %s2447_s14, %s1857_s13  ;;  %p1861_p8 = scmp.lt.u32.totalorder %s1857_s13, %s2447_s14 }
 0x9a9   :  { %p1863_p9 = pnand %p1861_p8, %p1858_p7 }
 0x9ab   :  { %1866 = shalt.err (!%p1863_p9)
}
 0x9ac   :  { %1422 = dma.vmem_to_hbm [thread:$0]  %s1420_s25, 32, %s2447_s14, [#allocation4]  }
 0x9ad   :  { %1869 = dma.done.wait [#allocation4], 32  }
 0x9ae   :  { %1870 = vsyncadd [#allocation4], 4294967264 }
 0x9af   :  { %1871 = dma.done.wait [#allocation7], 16  }
 0x9b0   :  { %1872 = vsyncadd [#allocation7], 4294967280 }
 0x9b1   :  { %1439 = vsyncpa [#allocation3], 1 }
 0x9b2   :  { %1440 = vsyncpa [#allocation4], 1 }
 0x9b3   :  { %1441 = vsyncpa [#allocation7], 1 }

</bundles_post_ra>
